<compile_context>
chip_gen: v7x
topology: tpu7x:2x2x1
jax: 0.10.0
libtpu: 0.0.40
codegen_flags: <defaults>
</compile_context>

<pallas_src>
import functools

import jax
import jax.numpy as jnp
from jax import lax
from jax.experimental import pallas as pl
from jax.experimental.pallas import tpu as pltpu


# ----------------------------------------------------------------------------
# Fused kernel: in-kernel embedding gather + two fused LSTMs + MLP head.
# ----------------------------------------------------------------------------
def fused_baseline_lstm_kernel(
        prem_idx_ref, hypo_idx_ref,        # (T*Bp, 1) int32, time-major rows
        tab_p_ref, tab_h_ref,              # (Vp, 8H) projected embedding tables
        whh_ref,                           # (2H, 8H) block-diag recurrent weights
        w1_ref, b1_ref, g1_ref, be1_ref,   # (2H, 512), (1, 512) x3
        w2_ref, b2_ref, g2_ref, be2_ref,   # (512, 128), (1, 128) x3
        w3_ref, b3_ref,                    # (128, 128), (1, 128)
        out_ref,                           # (Bp, 128)  (cols >= 3 are ~0)
        xpre_ref,                          # VMEM scratch (T*Bp, 8H)
        *, valid_batch):
    TB = prem_idx_ref.shape[0]
    Vp = tab_p_ref.shape[0]
    Bp = out_ref.shape[0]
    T = TB // Bp
    H2 = whh_ref.shape[0]                  # 2H (fused prem|hypo hidden width)
    H = H2 // 2
    G = 8 * H                              # fused gate width

    # ---- Embedding gather + input projection, hoisted out of the recurrence.
    # Tables already hold  emb @ W_ih^T + bias  in the fused gate layout, so a
    # one-hot matmul gathers EVERY timestep's input pre-activation in one MXU
    # pass (M = T*Bp) with no HBM round trip and nothing left on the serial
    # h_{t-1} -> h_t chain except the recurrent matmul itself.
    vio = lax.broadcasted_iota(jnp.int32, (TB, Vp), 1)
    oh_p = (vio == prem_idx_ref[...]).astype(jnp.float32)      # (TB, Vp)
    oh_h = (vio == hypo_idx_ref[...]).astype(jnp.float32)
    xpre_ref[...] = (
        jnp.dot(oh_p, tab_p_ref[...], preferred_element_type=jnp.float32)
        + jnp.dot(oh_h, tab_h_ref[...], preferred_element_type=jnp.float32))

    whh = whh_ref[...]

    # Static lane mask selecting the tanh ('g') gate block, columns [4H, 6H).
    lane = lax.broadcasted_iota(jnp.int32, (Bp, G), 1)
    g_mask = (lane >= 4 * H) & (lane < 6 * H)

    h = jnp.zeros((Bp, H2), jnp.float32)   # [h_prem | h_hypo]
    c = jnp.zeros((Bp, H2), jnp.float32)   # [c_prem | c_hypo]

    # Fully unrolled recurrence (T small & static): one (Bp,2H)x(2H,8H) matmul
    # per step; gates evaluated on whole 256-lane slabs (sigmoid + tanh on the
    # EUP, combined with a static lane select); all slices at 64-lane bounds.
    for t in range(T):
        pre = xpre_ref[pl.ds(t * Bp, Bp), :] + jnp.dot(
            h, whh, preferred_element_type=jnp.float32)         # (Bp, 8H)
        sig = jax.nn.sigmoid(pre)
        tnh = jnp.tanh(pre)
        act = jnp.where(g_mask, tnh, sig)
        i_g = act[:, 0 * H2:1 * H2]
        f_g = act[:, 1 * H2:2 * H2]
        g_g = act[:, 2 * H2:3 * H2]
        o_g = act[:, 3 * H2:4 * H2]
        c = f_g * c + i_g * g_g
        h = o_g * jnp.tanh(c)

    # ---- MLP head: Linear->BN->ReLU x2 -> Linear -> Softmax -----------------
    # Training-mode BatchNorm (batch statistics, biased variance, eps=1e-5)
    # over the *valid* batch rows only; padded batch rows carry garbage hidden
    # states (token id 0), are excluded from the reductions here, and are
    # sliced off by the wrapper.  (If the PyTorch reference is run in eval()
    # mode with running stats, results will differ by construction.)
    row_ids = lax.broadcasted_iota(jnp.int32, (Bp, 1), 0)
    row_mask = (row_ids < valid_batch).astype(jnp.float32)
    inv_b = 1.0 / float(valid_batch)

    def bn_relu(x, gamma, beta):
        mean = jnp.sum(x * row_mask, axis=0, keepdims=True) * inv_b
        diff = (x - mean) * row_mask
        var = jnp.sum(diff * diff, axis=0, keepdims=True) * inv_b
        xn = (x - mean) * lax.rsqrt(var + 1e-5)
        return jnp.maximum(xn * gamma + beta, 0.0)

    # layer1 consumes [h_prem | h_hypo] directly — h is already that concat.
    h1 = jnp.dot(h, w1_ref[...], preferred_element_type=jnp.float32) + b1_ref[...]
    h1 = bn_relu(h1, g1_ref[...], be1_ref[...])
    h2 = jnp.dot(h1, w2_ref[...], preferred_element_type=jnp.float32) + b2_ref[...]
    h2 = bn_relu(h2, g2_ref[...], be2_ref[...])
    logits = (jnp.dot(h2, w3_ref[...], preferred_element_type=jnp.float32)
              + b3_ref[...])                 # padded classes biased to -1e30

    # Softmax over the (lane-padded) class axis; padded classes get exactly 0.
    m = jnp.max(logits, axis=-1, keepdims=True)
    e = jnp.exp(logits - m)
    out_ref[...] = e / jnp.sum(e, axis=-1, keepdims=True)


# ----------------------------------------------------------------------------
# Parameter construction.  Sampling mirrors Baseline_LSTM.init_weights
# (uniform(-0.1, 0.1) for embeddings + LSTMs, normal(0, 0.02) for Linear / BN
# weights, zero biases); the tensors are then re-packed into the fused,
# lane-aligned layout the kernel consumes.  The re-pack is a pure
# re-parameterization: forward semantics are identical.
# ----------------------------------------------------------------------------
def init_params(key, emb_size, hidden_size, vocab_size):
    ks = jax.random.split(key, 16)
    initrange = 0.1
    init_std = 0.02
    H, E = hidden_size, emb_size
    V = vocab_size + 4
    G = 8 * H                              # fused gate width
    Vp = ((V + 127) // 128) * 128          # lane-padded vocab for one-hot gather

    def u(k, shape):
        return jax.random.uniform(k, shape, jnp.float32, -initrange, initrange)

    def n(k, shape):
        return init_std * jax.random.normal(k, shape, jnp.float32)

    emb_prem = u(ks[0], (V, E))
    emb_hypo = u(ks[1], (V, E))

    # Fused gate column layout: [i_p i_h | f_p f_h | g_p g_h | o_p o_h]
    # (PyTorch gate order i,f,g,o; li = 0 for premise LSTM, 1 for hypothesis).
    def pack_lstm(emb, k_base, li):
        w_ih = u(ks[k_base + 0], (4 * H, E))               # PyTorch (4H, E)
        w_hh = u(ks[k_base + 1], (4 * H, H))               # PyTorch (4H, H)
        b = u(ks[k_base + 2], (4 * H,)) + u(ks[k_base + 3], (4 * H,))
        proj = emb @ w_ih.T + b                            # (V, 4H), [i,f,g,o]
        tab = jnp.zeros((Vp, G), jnp.float32)
        whh_rows = jnp.zeros((H, G), jnp.float32)
        for gi in range(4):
            col = gi * 2 * H + li * H
            tab = tab.at[:V, col:col + H].set(proj[:, gi * H:(gi + 1) * H])
            whh_rows = whh_rows.at[:, col:col + H].set(
                w_hh[gi * H:(gi + 1) * H, :].T)
        return tab, whh_rows

    tab_prem, whh_p_rows = pack_lstm(emb_prem, 2, 0)
    tab_hypo, whh_h_rows = pack_lstm(emb_hypo, 6, 1)
    whh = jnp.concatenate([whh_p_rows, whh_h_rows], axis=0)   # (2H, G) block-diag

    # MLP head weights, lane-padded (400 -> 512, 100 -> 128, classes -> 128).
    w1 = n(ks[10], (400, 2 * H))
    g1 = n(ks[11], (1, 400))
    w2 = n(ks[12], (100, 400))
    g2 = n(ks[13], (1, 100))
    w3 = n(ks[14], (3, 100))

    def pad_to(x, shape):
        out = jnp.zeros(shape, jnp.float32)
        return out.at[tuple(slice(0, s) for s in x.shape)].set(x)

    params = {
        "tab_prem": tab_prem, "tab_hypo": tab_hypo, "whh": whh,
        "w1": pad_to(w1.T, (2 * H, 512)), "b1": jnp.zeros((1, 512), jnp.float32),
        "g1": pad_to(g1, (1, 512)),       "be1": jnp.zeros((1, 512), jnp.float32),
        "w2": pad_to(w2.T, (512, 128)),   "b2": jnp.zeros((1, 128), jnp.float32),
        "g2": pad_to(g2, (1, 128)),       "be2": jnp.zeros((1, 128), jnp.float32),
        "w3": pad_to(w3.T, (128, 128)),
        # Padded logit columns get a huge negative bias so softmax over the
        # full 128-lane slab equals softmax over the real 3 classes.
        "b3": jnp.full((1, 128), -1e30, jnp.float32).at[:, :3].set(0.0),
    }
    return params


# ----------------------------------------------------------------------------
# Full forward pass
# ----------------------------------------------------------------------------
def baseline_lstm_forward(params, premise_indices, hypothesis_indices):
    B, T = premise_indices.shape
    Bp = max(8, ((B + 7) // 8) * 8)        # pad batch to the f32 sublane width
    pad = Bp - B
    G = params["whh"].shape[1]

    # Only the tiny int32 index arrays are padded / transposed in XLA; padded
    # rows reuse token id 0, are excluded from BN statistics in-kernel, and
    # are sliced off below.  Kernel row r corresponds to (t, b) = divmod(r, Bp).
    def prep(idx):
        idx = jnp.pad(idx, ((0, pad), (0, 0))).astype(jnp.int32)
        return idx.T.reshape(T * Bp, 1)

    args = (prep(premise_indices), prep(hypothesis_indices),
            params["tab_prem"], params["tab_hypo"], params["whh"],
            params["w1"], params["b1"], params["g1"], params["be1"],
            params["w2"], params["b2"], params["g2"], params["be2"],
            params["w3"], params["b3"])

    vmem = pl.BlockSpec(memory_space=pltpu.MemorySpace.VMEM)
    out_padded = pl.pallas_call(
        functools.partial(fused_baseline_lstm_kernel, valid_batch=B),
        out_shape=jax.ShapeDtypeStruct((Bp, 128), jnp.float32),
        in_specs=[vmem] * len(args),
        out_specs=vmem,
        scratch_shapes=[pltpu.VMEM((T * Bp, G), jnp.float32)],
    )(*args)
    # Slice off batch padding and the lane padding of the 3 classes.
    return out_padded[:B, :3]
    # TODO(synk): register_hook / store_grad_norm is a backward-pass hook with
    # no forward-pass effect; intentionally not implemented.
    # NOTE: no grid -> single TensorCore; at batch=2 this is optimal.  If batch
    # scales, add a grid over Bp tiles with dimension_semantics=("parallel",)
    # so both v7x cores split the batch.


if __name__ == "__main__":
    emb_size = 32
    hidden_size = 32
    vocab_size = 100
    batch = 2
    seq = 8

    key = jax.random.PRNGKey(0)
    k_params, k_prem, k_hypo = jax.random.split(key, 3)

    params = init_params(k_params, emb_size, hidden_size, vocab_size)
    premise_indices = jax.random.randint(k_prem, (batch, seq), 0, vocab_size + 4)
    hypothesis_indices = jax.random.randint(k_hypo, (batch, seq), 0, vocab_size + 4)

    probs = jax.jit(baseline_lstm_forward)(params, premise_indices,
                                           hypothesis_indices)
    probs = jax.block_until_ready(probs)

    assert probs.shape == (batch, 3)
    assert bool(jnp.all(jnp.isfinite(probs)))
    assert bool(jnp.allclose(jnp.sum(probs, axis=-1), 1.0, atol=1e-5))
    print("KERNEL_OK")
</pallas_src>

<mosaic_0001>
module attributes {stable_mosaic.version = 11 : i64} {
  func.func @fused_baseline_lstm_kernel(%arg0: memref<64x1xi32, #tpu.memory_space<vmem>>, %arg1: memref<64x1xi32, #tpu.memory_space<vmem>>, %arg2: memref<128x256xf32, #tpu.memory_space<vmem>>, %arg3: memref<128x256xf32, #tpu.memory_space<vmem>>, %arg4: memref<64x256xf32, #tpu.memory_space<vmem>>, %arg5: memref<64x512xf32, #tpu.memory_space<vmem>>, %arg6: memref<1x512xf32, #tpu.memory_space<vmem>>, %arg7: memref<1x512xf32, #tpu.memory_space<vmem>>, %arg8: memref<1x512xf32, #tpu.memory_space<vmem>>, %arg9: memref<512x128xf32, #tpu.memory_space<vmem>>, %arg10: memref<1x128xf32, #tpu.memory_space<vmem>>, %arg11: memref<1x128xf32, #tpu.memory_space<vmem>>, %arg12: memref<1x128xf32, #tpu.memory_space<vmem>>, %arg13: memref<128x128xf32, #tpu.memory_space<vmem>>, %arg14: memref<1x128xf32, #tpu.memory_space<vmem>>, %arg15: memref<8x128xf32, #tpu.memory_space<vmem>>, %arg16: memref<64x256xf32, #tpu.memory_space<vmem>>) attributes {dimension_semantics = [], scalar_prefetch = 0 : i64, scratch_operands = 1 : i64, tpu.core_type = #tpu.core_type<tc>} {
    %0 = tpu.iota {dimensions = array<i32: 1>} : vector<64x128xi32>
    %c0 = arith.constant 0 : index
    %c0_0 = arith.constant 0 : index
    %1 = vector.load %arg0[%c0, %c0_0] : memref<64x1xi32, #tpu.memory_space<vmem>>, vector<64x1xi32>
    %2 = vector.broadcast %1 : vector<64x1xi32> to vector<64x128xi32>
    %3 = arith.cmpi eq, %0, %2 : vector<64x128xi32>
    %4 = arith.extui %3 : vector<64x128xi1> to vector<64x128xi32>
    %5 = arith.sitofp %4 : vector<64x128xi32> to vector<64x128xf32>
    %c0_1 = arith.constant 0 : index
    %c0_2 = arith.constant 0 : index
    %6 = vector.load %arg1[%c0_1, %c0_2] : memref<64x1xi32, #tpu.memory_space<vmem>>, vector<64x1xi32>
    %7 = vector.broadcast %6 : vector<64x1xi32> to vector<64x128xi32>
    %8 = arith.cmpi eq, %0, %7 : vector<64x128xi32>
    %9 = arith.extui %8 : vector<64x128xi1> to vector<64x128xi32>
    %10 = arith.sitofp %9 : vector<64x128xi32> to vector<64x128xf32>
    %c0_3 = arith.constant 0 : index
    %c0_4 = arith.constant 0 : index
    %11 = vector.load %arg2[%c0_3, %c0_4] : memref<128x256xf32, #tpu.memory_space<vmem>>, vector<128x256xf32>
    %cst = arith.constant dense<0.000000e+00> : vector<64x256xf32>
    %12 = tpu.matmul %5, %11, %cst {dimension_numbers = #tpu.dot_dimension_numbers<[1], [0], [0], [1], [0, 0, 1, 1], [], []>} : vector<64x128xf32>, vector<128x256xf32>, vector<64x256xf32> -> vector<64x256xf32>
    %c0_5 = arith.constant 0 : index
    %c0_6 = arith.constant 0 : index
    %13 = vector.load %arg3[%c0_5, %c0_6] : memref<128x256xf32, #tpu.memory_space<vmem>>, vector<128x256xf32>
    %cst_7 = arith.constant dense<0.000000e+00> : vector<64x256xf32>
    %14 = tpu.matmul %10, %13, %cst_7 {dimension_numbers = #tpu.dot_dimension_numbers<[1], [0], [0], [1], [0, 0, 1, 1], [], []>} : vector<64x128xf32>, vector<128x256xf32>, vector<64x256xf32> -> vector<64x256xf32>
    %15 = arith.addf %12, %14 : vector<64x256xf32>
    %c0_8 = arith.constant 0 : index
    %c0_9 = arith.constant 0 : index
    %16 = vector.load %arg16[%c0_8, %c0_9] : memref<64x256xf32, #tpu.memory_space<vmem>>, vector<64x256xf32>
    tpu.vector_store %arg16[%c0_8, %c0_9], %15 {strides = array<i32>} : memref<64x256xf32, #tpu.memory_space<vmem>>, vector<64x256xf32>,
    %c0_10 = arith.constant 0 : index
    %c0_11 = arith.constant 0 : index
    %17 = vector.load %arg4[%c0_10, %c0_11] : memref<64x256xf32, #tpu.memory_space<vmem>>, vector<64x256xf32>
    %18 = tpu.iota {dimensions = array<i32: 1>} : vector<8x256xi32>
    %c128_i32 = arith.constant 128 : i32
    %19 = vector.broadcast %c128_i32 : i32 to vector<8x256xi32>
    %20 = arith.cmpi sge, %18, %19 : vector<8x256xi32>
    %c192_i32 = arith.constant 192 : i32
    %21 = vector.broadcast %c192_i32 : i32 to vector<8x256xi32>
    %22 = arith.cmpi slt, %18, %21 : vector<8x256xi32>
    %23 = arith.andi %20, %22 : vector<8x256xi1>
    %cst_12 = arith.constant 0.000000e+00 : f32
    %24 = vector.broadcast %cst_12 : f32 to vector<8x64xf32>
    %cst_13 = arith.constant 0.000000e+00 : f32
    %25 = vector.broadcast %cst_13 : f32 to vector<8x64xf32>
    %c0_14 = arith.constant 0 : index
    %c0_15 = arith.constant 0 : index
    %26 = vector.load %arg16[%c0_14, %c0_15] : memref<64x256xf32, #tpu.memory_space<vmem>>, vector<8x256xf32>
    %cst_16 = arith.constant dense<0.000000e+00> : vector<8x256xf32>
    %27 = tpu.matmul %24, %17, %cst_16 {dimension_numbers = #tpu.dot_dimension_numbers<[1], [0], [0], [1], [0, 0, 1, 1], [], []>} : vector<8x64xf32>, vector<64x256xf32>, vector<8x256xf32> -> vector<8x256xf32>
    %28 = arith.addf %26, %27 : vector<8x256xf32>
    %29 = arith.negf %28 : vector<8x256xf32>
    %30 = math.exp %29 : vector<8x256xf32>
    %cst_17 = arith.constant 1.000000e+00 : f32
    %31 = vector.broadcast %cst_17 : f32 to vector<8x256xf32>
    %32 = arith.addf %31, %30 : vector<8x256xf32>
    %33 = arith.divf %31, %32 : vector<8x256xf32>
    %34 = math.tanh %28 : vector<8x256xf32>
    %35 = arith.select %23, %34, %33 : vector<8x256xi1>, vector<8x256xf32>
    %36 = vector.extract_strided_slice %35 {offsets = [0, 0], sizes = [8, 64], strides = [1, 1]} : vector<8x256xf32> to vector<8x64xf32>
    %37 = vector.extract_strided_slice %35 {offsets = [0, 64], sizes = [8, 64], strides = [1, 1]} : vector<8x256xf32> to vector<8x64xf32>
    %38 = vector.extract_strided_slice %35 {offsets = [0, 128], sizes = [8, 64], strides = [1, 1]} : vector<8x256xf32> to vector<8x64xf32>
    %39 = vector.extract_strided_slice %35 {offsets = [0, 192], sizes = [8, 64], strides = [1, 1]} : vector<8x256xf32> to vector<8x64xf32>
    %40 = arith.mulf %37, %25 : vector<8x64xf32>
    %41 = arith.mulf %36, %38 : vector<8x64xf32>
    %42 = arith.addf %40, %41 : vector<8x64xf32>
    %43 = math.tanh %42 : vector<8x64xf32>
    %44 = arith.mulf %39, %43 : vector<8x64xf32>
    %c8 = arith.constant 8 : index
    %c0_18 = arith.constant 0 : index
    %45 = vector.load %arg16[%c8, %c0_18] : memref<64x256xf32, #tpu.memory_space<vmem>>, vector<8x256xf32>
    %cst_19 = arith.constant dense<0.000000e+00> : vector<8x256xf32>
    %46 = tpu.matmul %44, %17, %cst_19 {dimension_numbers = #tpu.dot_dimension_numbers<[1], [0], [0], [1], [0, 0, 1, 1], [], []>} : vector<8x64xf32>, vector<64x256xf32>, vector<8x256xf32> -> vector<8x256xf32>
    %47 = arith.addf %45, %46 : vector<8x256xf32>
    %48 = arith.negf %47 : vector<8x256xf32>
    %49 = math.exp %48 : vector<8x256xf32>
    %cst_20 = arith.constant 1.000000e+00 : f32
    %50 = vector.broadcast %cst_20 : f32 to vector<8x256xf32>
    %51 = arith.addf %50, %49 : vector<8x256xf32>
    %52 = arith.divf %50, %51 : vector<8x256xf32>
    %53 = math.tanh %47 : vector<8x256xf32>
    %54 = arith.select %23, %53, %52 : vector<8x256xi1>, vector<8x256xf32>
    %55 = vector.extract_strided_slice %54 {offsets = [0, 0], sizes = [8, 64], strides = [1, 1]} : vector<8x256xf32> to vector<8x64xf32>
    %56 = vector.extract_strided_slice %54 {offsets = [0, 64], sizes = [8, 64], strides = [1, 1]} : vector<8x256xf32> to vector<8x64xf32>
    %57 = vector.extract_strided_slice %54 {offsets = [0, 128], sizes = [8, 64], strides = [1, 1]} : vector<8x256xf32> to vector<8x64xf32>
    %58 = vector.extract_strided_slice %54 {offsets = [0, 192], sizes = [8, 64], strides = [1, 1]} : vector<8x256xf32> to vector<8x64xf32>
    %59 = arith.mulf %56, %42 : vector<8x64xf32>
    %60 = arith.mulf %55, %57 : vector<8x64xf32>
    %61 = arith.addf %59, %60 : vector<8x64xf32>
    %62 = math.tanh %61 : vector<8x64xf32>
    %63 = arith.mulf %58, %62 : vector<8x64xf32>
    %c16 = arith.constant 16 : index
    %c0_21 = arith.constant 0 : index
    %64 = vector.load %arg16[%c16, %c0_21] : memref<64x256xf32, #tpu.memory_space<vmem>>, vector<8x256xf32>
    %cst_22 = arith.constant dense<0.000000e+00> : vector<8x256xf32>
    %65 = tpu.matmul %63, %17, %cst_22 {dimension_numbers = #tpu.dot_dimension_numbers<[1], [0], [0], [1], [0, 0, 1, 1], [], []>} : vector<8x64xf32>, vector<64x256xf32>, vector<8x256xf32> -> vector<8x256xf32>
    %66 = arith.addf %64, %65 : vector<8x256xf32>
    %67 = arith.negf %66 : vector<8x256xf32>
    %68 = math.exp %67 : vector<8x256xf32>
    %cst_23 = arith.constant 1.000000e+00 : f32
    %69 = vector.broadcast %cst_23 : f32 to vector<8x256xf32>
    %70 = arith.addf %69, %68 : vector<8x256xf32>
    %71 = arith.divf %69, %70 : vector<8x256xf32>
    %72 = math.tanh %66 : vector<8x256xf32>
    %73 = arith.select %23, %72, %71 : vector<8x256xi1>, vector<8x256xf32>
    %74 = vector.extract_strided_slice %73 {offsets = [0, 0], sizes = [8, 64], strides = [1, 1]} : vector<8x256xf32> to vector<8x64xf32>
    %75 = vector.extract_strided_slice %73 {offsets = [0, 64], sizes = [8, 64], strides = [1, 1]} : vector<8x256xf32> to vector<8x64xf32>
    %76 = vector.extract_strided_slice %73 {offsets = [0, 128], sizes = [8, 64], strides = [1, 1]} : vector<8x256xf32> to vector<8x64xf32>
    %77 = vector.extract_strided_slice %73 {offsets = [0, 192], sizes = [8, 64], strides = [1, 1]} : vector<8x256xf32> to vector<8x64xf32>
    %78 = arith.mulf %75, %61 : vector<8x64xf32>
    %79 = arith.mulf %74, %76 : vector<8x64xf32>
    %80 = arith.addf %78, %79 : vector<8x64xf32>
    %81 = math.tanh %80 : vector<8x64xf32>
    %82 = arith.mulf %77, %81 : vector<8x64xf32>
    %c24 = arith.constant 24 : index
    %c0_24 = arith.constant 0 : index
    %83 = vector.load %arg16[%c24, %c0_24] : memref<64x256xf32, #tpu.memory_space<vmem>>, vector<8x256xf32>
    %cst_25 = arith.constant dense<0.000000e+00> : vector<8x256xf32>
    %84 = tpu.matmul %82, %17, %cst_25 {dimension_numbers = #tpu.dot_dimension_numbers<[1], [0], [0], [1], [0, 0, 1, 1], [], []>} : vector<8x64xf32>, vector<64x256xf32>, vector<8x256xf32> -> vector<8x256xf32>
    %85 = arith.addf %83, %84 : vector<8x256xf32>
    %86 = arith.negf %85 : vector<8x256xf32>
    %87 = math.exp %86 : vector<8x256xf32>
    %cst_26 = arith.constant 1.000000e+00 : f32
    %88 = vector.broadcast %cst_26 : f32 to vector<8x256xf32>
    %89 = arith.addf %88, %87 : vector<8x256xf32>
    %90 = arith.divf %88, %89 : vector<8x256xf32>
    %91 = math.tanh %85 : vector<8x256xf32>
    %92 = arith.select %23, %91, %90 : vector<8x256xi1>, vector<8x256xf32>
    %93 = vector.extract_strided_slice %92 {offsets = [0, 0], sizes = [8, 64], strides = [1, 1]} : vector<8x256xf32> to vector<8x64xf32>
    %94 = vector.extract_strided_slice %92 {offsets = [0, 64], sizes = [8, 64], strides = [1, 1]} : vector<8x256xf32> to vector<8x64xf32>
    %95 = vector.extract_strided_slice %92 {offsets = [0, 128], sizes = [8, 64], strides = [1, 1]} : vector<8x256xf32> to vector<8x64xf32>
    %96 = vector.extract_strided_slice %92 {offsets = [0, 192], sizes = [8, 64], strides = [1, 1]} : vector<8x256xf32> to vector<8x64xf32>
    %97 = arith.mulf %94, %80 : vector<8x64xf32>
    %98 = arith.mulf %93, %95 : vector<8x64xf32>
    %99 = arith.addf %97, %98 : vector<8x64xf32>
    %100 = math.tanh %99 : vector<8x64xf32>
    %101 = arith.mulf %96, %100 : vector<8x64xf32>
    %c32 = arith.constant 32 : index
    %c0_27 = arith.constant 0 : index
    %102 = vector.load %arg16[%c32, %c0_27] : memref<64x256xf32, #tpu.memory_space<vmem>>, vector<8x256xf32>
    %cst_28 = arith.constant dense<0.000000e+00> : vector<8x256xf32>
    %103 = tpu.matmul %101, %17, %cst_28 {dimension_numbers = #tpu.dot_dimension_numbers<[1], [0], [0], [1], [0, 0, 1, 1], [], []>} : vector<8x64xf32>, vector<64x256xf32>, vector<8x256xf32> -> vector<8x256xf32>
    %104 = arith.addf %102, %103 : vector<8x256xf32>
    %105 = arith.negf %104 : vector<8x256xf32>
    %106 = math.exp %105 : vector<8x256xf32>
    %cst_29 = arith.constant 1.000000e+00 : f32
    %107 = vector.broadcast %cst_29 : f32 to vector<8x256xf32>
    %108 = arith.addf %107, %106 : vector<8x256xf32>
    %109 = arith.divf %107, %108 : vector<8x256xf32>
    %110 = math.tanh %104 : vector<8x256xf32>
    %111 = arith.select %23, %110, %109 : vector<8x256xi1>, vector<8x256xf32>
    %112 = vector.extract_strided_slice %111 {offsets = [0, 0], sizes = [8, 64], strides = [1, 1]} : vector<8x256xf32> to vector<8x64xf32>
    %113 = vector.extract_strided_slice %111 {offsets = [0, 64], sizes = [8, 64], strides = [1, 1]} : vector<8x256xf32> to vector<8x64xf32>
    %114 = vector.extract_strided_slice %111 {offsets = [0, 128], sizes = [8, 64], strides = [1, 1]} : vector<8x256xf32> to vector<8x64xf32>
    %115 = vector.extract_strided_slice %111 {offsets = [0, 192], sizes = [8, 64], strides = [1, 1]} : vector<8x256xf32> to vector<8x64xf32>
    %116 = arith.mulf %113, %99 : vector<8x64xf32>
    %117 = arith.mulf %112, %114 : vector<8x64xf32>
    %118 = arith.addf %116, %117 : vector<8x64xf32>
    %119 = math.tanh %118 : vector<8x64xf32>
    %120 = arith.mulf %115, %119 : vector<8x64xf32>
    %c40 = arith.constant 40 : index
    %c0_30 = arith.constant 0 : index
    %121 = vector.load %arg16[%c40, %c0_30] : memref<64x256xf32, #tpu.memory_space<vmem>>, vector<8x256xf32>
    %cst_31 = arith.constant dense<0.000000e+00> : vector<8x256xf32>
    %122 = tpu.matmul %120, %17, %cst_31 {dimension_numbers = #tpu.dot_dimension_numbers<[1], [0], [0], [1], [0, 0, 1, 1], [], []>} : vector<8x64xf32>, vector<64x256xf32>, vector<8x256xf32> -> vector<8x256xf32>
    %123 = arith.addf %121, %122 : vector<8x256xf32>
    %124 = arith.negf %123 : vector<8x256xf32>
    %125 = math.exp %124 : vector<8x256xf32>
    %cst_32 = arith.constant 1.000000e+00 : f32
    %126 = vector.broadcast %cst_32 : f32 to vector<8x256xf32>
    %127 = arith.addf %126, %125 : vector<8x256xf32>
    %128 = arith.divf %126, %127 : vector<8x256xf32>
    %129 = math.tanh %123 : vector<8x256xf32>
    %130 = arith.select %23, %129, %128 : vector<8x256xi1>, vector<8x256xf32>
    %131 = vector.extract_strided_slice %130 {offsets = [0, 0], sizes = [8, 64], strides = [1, 1]} : vector<8x256xf32> to vector<8x64xf32>
    %132 = vector.extract_strided_slice %130 {offsets = [0, 64], sizes = [8, 64], strides = [1, 1]} : vector<8x256xf32> to vector<8x64xf32>
    %133 = vector.extract_strided_slice %130 {offsets = [0, 128], sizes = [8, 64], strides = [1, 1]} : vector<8x256xf32> to vector<8x64xf32>
    %134 = vector.extract_strided_slice %130 {offsets = [0, 192], sizes = [8, 64], strides = [1, 1]} : vector<8x256xf32> to vector<8x64xf32>
    %135 = arith.mulf %132, %118 : vector<8x64xf32>
    %136 = arith.mulf %131, %133 : vector<8x64xf32>
    %137 = arith.addf %135, %136 : vector<8x64xf32>
    %138 = math.tanh %137 : vector<8x64xf32>
    %139 = arith.mulf %134, %138 : vector<8x64xf32>
    %c48 = arith.constant 48 : index
    %c0_33 = arith.constant 0 : index
    %140 = vector.load %arg16[%c48, %c0_33] : memref<64x256xf32, #tpu.memory_space<vmem>>, vector<8x256xf32>
    %cst_34 = arith.constant dense<0.000000e+00> : vector<8x256xf32>
    %141 = tpu.matmul %139, %17, %cst_34 {dimension_numbers = #tpu.dot_dimension_numbers<[1], [0], [0], [1], [0, 0, 1, 1], [], []>} : vector<8x64xf32>, vector<64x256xf32>, vector<8x256xf32> -> vector<8x256xf32>
    %142 = arith.addf %140, %141 : vector<8x256xf32>
    %143 = arith.negf %142 : vector<8x256xf32>
    %144 = math.exp %143 : vector<8x256xf32>
    %cst_35 = arith.constant 1.000000e+00 : f32
    %145 = vector.broadcast %cst_35 : f32 to vector<8x256xf32>
    %146 = arith.addf %145, %144 : vector<8x256xf32>
    %147 = arith.divf %145, %146 : vector<8x256xf32>
    %148 = math.tanh %142 : vector<8x256xf32>
    %149 = arith.select %23, %148, %147 : vector<8x256xi1>, vector<8x256xf32>
    %150 = vector.extract_strided_slice %149 {offsets = [0, 0], sizes = [8, 64], strides = [1, 1]} : vector<8x256xf32> to vector<8x64xf32>
    %151 = vector.extract_strided_slice %149 {offsets = [0, 64], sizes = [8, 64], strides = [1, 1]} : vector<8x256xf32> to vector<8x64xf32>
    %152 = vector.extract_strided_slice %149 {offsets = [0, 128], sizes = [8, 64], strides = [1, 1]} : vector<8x256xf32> to vector<8x64xf32>
    %153 = vector.extract_strided_slice %149 {offsets = [0, 192], sizes = [8, 64], strides = [1, 1]} : vector<8x256xf32> to vector<8x64xf32>
    %154 = arith.mulf %151, %137 : vector<8x64xf32>
    %155 = arith.mulf %150, %152 : vector<8x64xf32>
    %156 = arith.addf %154, %155 : vector<8x64xf32>
    %157 = math.tanh %156 : vector<8x64xf32>
    %158 = arith.mulf %153, %157 : vector<8x64xf32>
    %c56 = arith.constant 56 : index
    %c0_36 = arith.constant 0 : index
    %159 = vector.load %arg16[%c56, %c0_36] : memref<64x256xf32, #tpu.memory_space<vmem>>, vector<8x256xf32>
    %cst_37 = arith.constant dense<0.000000e+00> : vector<8x256xf32>
    %160 = tpu.matmul %158, %17, %cst_37 {dimension_numbers = #tpu.dot_dimension_numbers<[1], [0], [0], [1], [0, 0, 1, 1], [], []>} : vector<8x64xf32>, vector<64x256xf32>, vector<8x256xf32> -> vector<8x256xf32>
    %161 = arith.addf %159, %160 : vector<8x256xf32>
    %162 = arith.negf %161 : vector<8x256xf32>
    %163 = math.exp %162 : vector<8x256xf32>
    %cst_38 = arith.constant 1.000000e+00 : f32
    %164 = vector.broadcast %cst_38 : f32 to vector<8x256xf32>
    %165 = arith.addf %164, %163 : vector<8x256xf32>
    %166 = arith.divf %164, %165 : vector<8x256xf32>
    %167 = math.tanh %161 : vector<8x256xf32>
    %168 = arith.select %23, %167, %166 : vector<8x256xi1>, vector<8x256xf32>
    %169 = vector.extract_strided_slice %168 {offsets = [0, 0], sizes = [8, 64], strides = [1, 1]} : vector<8x256xf32> to vector<8x64xf32>
    %170 = vector.extract_strided_slice %168 {offsets = [0, 64], sizes = [8, 64], strides = [1, 1]} : vector<8x256xf32> to vector<8x64xf32>
    %171 = vector.extract_strided_slice %168 {offsets = [0, 128], sizes = [8, 64], strides = [1, 1]} : vector<8x256xf32> to vector<8x64xf32>
    %172 = vector.extract_strided_slice %168 {offsets = [0, 192], sizes = [8, 64], strides = [1, 1]} : vector<8x256xf32> to vector<8x64xf32>
    %173 = arith.mulf %170, %156 : vector<8x64xf32>
    %174 = arith.mulf %169, %171 : vector<8x64xf32>
    %175 = arith.addf %173, %174 : vector<8x64xf32>
    %176 = math.tanh %175 : vector<8x64xf32>
    %177 = arith.mulf %172, %176 : vector<8x64xf32>
    %178 = tpu.iota {dimensions = array<i32: 0>} : vector<8x1xi32>
    %c2_i32 = arith.constant 2 : i32
    %179 = vector.broadcast %c2_i32 : i32 to vector<8x1xi32>
    %180 = arith.cmpi slt, %178, %179 : vector<8x1xi32>
    %181 = arith.extui %180 : vector<8x1xi1> to vector<8x1xi32>
    %182 = arith.sitofp %181 : vector<8x1xi32> to vector<8x1xf32>
    %c0_39 = arith.constant 0 : index
    %c0_40 = arith.constant 0 : index
    %183 = vector.load %arg5[%c0_39, %c0_40] : memref<64x512xf32, #tpu.memory_space<vmem>>, vector<64x512xf32>
    %cst_41 = arith.constant dense<0.000000e+00> : vector<8x512xf32>
    %184 = tpu.matmul %177, %183, %cst_41 {dimension_numbers = #tpu.dot_dimension_numbers<[1], [0], [0], [1], [0, 0, 1, 1], [], []>} : vector<8x64xf32>, vector<64x512xf32>, vector<8x512xf32> -> vector<8x512xf32>
    %c0_42 = arith.constant 0 : index
    %c0_43 = arith.constant 0 : index
    %185 = vector.load %arg6[%c0_42, %c0_43] : memref<1x512xf32, #tpu.memory_space<vmem>>, vector<1x512xf32>
    %186 = vector.broadcast %185 : vector<1x512xf32> to vector<8x512xf32>
    %187 = arith.addf %184, %186 : vector<8x512xf32>
    %c0_44 = arith.constant 0 : index
    %c0_45 = arith.constant 0 : index
    %188 = vector.load %arg7[%c0_44, %c0_45] : memref<1x512xf32, #tpu.memory_space<vmem>>, vector<1x512xf32>
    %c0_46 = arith.constant 0 : index
    %c0_47 = arith.constant 0 : index
    %189 = vector.load %arg8[%c0_46, %c0_47] : memref<1x512xf32, #tpu.memory_space<vmem>>, vector<1x512xf32>
    %190 = vector.broadcast %182 : vector<8x1xf32> to vector<8x512xf32>
    %191 = arith.mulf %187, %190 : vector<8x512xf32>
    %cst_48 = arith.constant dense<0.000000e+00> : vector<512xf32>
    %192 = vector.multi_reduction <add>, %191, %cst_48 [0] : vector<8x512xf32> to vector<512xf32>
    %193 = vector.shape_cast %192 : vector<512xf32> to vector<1x512xf32>
    %cst_49 = arith.constant 5.000000e-01 : f32
    %194 = vector.broadcast %cst_49 : f32 to vector<1x512xf32>
    %195 = arith.mulf %193, %194 : vector<1x512xf32>
    %196 = vector.broadcast %195 : vector<1x512xf32> to vector<8x512xf32>
    %197 = arith.subf %187, %196 : vector<8x512xf32>
    %198 = vector.broadcast %182 : vector<8x1xf32> to vector<8x512xf32>
    %199 = arith.mulf %197, %198 : vector<8x512xf32>
    %200 = arith.mulf %199, %199 : vector<8x512xf32>
    %cst_50 = arith.constant dense<0.000000e+00> : vector<512xf32>
    %201 = vector.multi_reduction <add>, %200, %cst_50 [0] : vector<8x512xf32> to vector<512xf32>
    %202 = vector.shape_cast %201 : vector<512xf32> to vector<1x512xf32>
    %cst_51 = arith.constant 5.000000e-01 : f32
    %203 = vector.broadcast %cst_51 : f32 to vector<1x512xf32>
    %204 = arith.mulf %202, %203 : vector<1x512xf32>
    %205 = vector.broadcast %195 : vector<1x512xf32> to vector<8x512xf32>
    %206 = arith.subf %187, %205 : vector<8x512xf32>
    %cst_52 = arith.constant 9.99999974E-6 : f32
    %207 = vector.broadcast %cst_52 : f32 to vector<1x512xf32>
    %208 = arith.addf %204, %207 : vector<1x512xf32>
    %209 = math.rsqrt %208 : vector<1x512xf32>
    %210 = vector.broadcast %209 : vector<1x512xf32> to vector<8x512xf32>
    %211 = arith.mulf %206, %210 : vector<8x512xf32>
    %212 = vector.broadcast %188 : vector<1x512xf32> to vector<8x512xf32>
    %213 = arith.mulf %211, %212 : vector<8x512xf32>
    %214 = vector.broadcast %189 : vector<1x512xf32> to vector<8x512xf32>
    %215 = arith.addf %213, %214 : vector<8x512xf32>
    %cst_53 = arith.constant 0.000000e+00 : f32
    %216 = vector.broadcast %cst_53 : f32 to vector<8x512xf32>
    %217 = arith.maximumf %215, %216 : vector<8x512xf32>
    %c0_54 = arith.constant 0 : index
    %c0_55 = arith.constant 0 : index
    %218 = vector.load %arg9[%c0_54, %c0_55] : memref<512x128xf32, #tpu.memory_space<vmem>>, vector<512x128xf32>
    %cst_56 = arith.constant dense<0.000000e+00> : vector<8x128xf32>
    %219 = tpu.matmul %217, %218, %cst_56 {dimension_numbers = #tpu.dot_dimension_numbers<[1], [0], [0], [1], [0, 0, 1, 1], [], []>} : vector<8x512xf32>, vector<512x128xf32>, vector<8x128xf32> -> vector<8x128xf32>
    %c0_57 = arith.constant 0 : index
    %c0_58 = arith.constant 0 : index
    %220 = vector.load %arg10[%c0_57, %c0_58] : memref<1x128xf32, #tpu.memory_space<vmem>>, vector<1x128xf32>
    %221 = vector.broadcast %220 : vector<1x128xf32> to vector<8x128xf32>
    %222 = arith.addf %219, %221 : vector<8x128xf32>
    %c0_59 = arith.constant 0 : index
    %c0_60 = arith.constant 0 : index
    %223 = vector.load %arg11[%c0_59, %c0_60] : memref<1x128xf32, #tpu.memory_space<vmem>>, vector<1x128xf32>
    %c0_61 = arith.constant 0 : index
    %c0_62 = arith.constant 0 : index
    %224 = vector.load %arg12[%c0_61, %c0_62] : memref<1x128xf32, #tpu.memory_space<vmem>>, vector<1x128xf32>
    %225 = vector.broadcast %182 : vector<8x1xf32> to vector<8x128xf32>
    %226 = arith.mulf %222, %225 : vector<8x128xf32>
    %cst_63 = arith.constant dense<0.000000e+00> : vector<128xf32>
    %227 = vector.multi_reduction <add>, %226, %cst_63 [0] : vector<8x128xf32> to vector<128xf32>
    %228 = vector.shape_cast %227 : vector<128xf32> to vector<1x128xf32>
    %cst_64 = arith.constant 5.000000e-01 : f32
    %229 = vector.broadcast %cst_64 : f32 to vector<1x128xf32>
    %230 = arith.mulf %228, %229 : vector<1x128xf32>
    %231 = vector.broadcast %230 : vector<1x128xf32> to vector<8x128xf32>
    %232 = arith.subf %222, %231 : vector<8x128xf32>
    %233 = vector.broadcast %182 : vector<8x1xf32> to vector<8x128xf32>
    %234 = arith.mulf %232, %233 : vector<8x128xf32>
    %235 = arith.mulf %234, %234 : vector<8x128xf32>
    %cst_65 = arith.constant dense<0.000000e+00> : vector<128xf32>
    %236 = vector.multi_reduction <add>, %235, %cst_65 [0] : vector<8x128xf32> to vector<128xf32>
    %237 = vector.shape_cast %236 : vector<128xf32> to vector<1x128xf32>
    %cst_66 = arith.constant 5.000000e-01 : f32
    %238 = vector.broadcast %cst_66 : f32 to vector<1x128xf32>
    %239 = arith.mulf %237, %238 : vector<1x128xf32>
    %240 = vector.broadcast %230 : vector<1x128xf32> to vector<8x128xf32>
    %241 = arith.subf %222, %240 : vector<8x128xf32>
    %cst_67 = arith.constant 9.99999974E-6 : f32
    %242 = vector.broadcast %cst_67 : f32 to vector<1x128xf32>
    %243 = arith.addf %239, %242 : vector<1x128xf32>
    %244 = math.rsqrt %243 : vector<1x128xf32>
    %245 = vector.broadcast %244 : vector<1x128xf32> to vector<8x128xf32>
    %246 = arith.mulf %241, %245 : vector<8x128xf32>
    %247 = vector.broadcast %223 : vector<1x128xf32> to vector<8x128xf32>
    %248 = arith.mulf %246, %247 : vector<8x128xf32>
    %249 = vector.broadcast %224 : vector<1x128xf32> to vector<8x128xf32>
    %250 = arith.addf %248, %249 : vector<8x128xf32>
    %cst_68 = arith.constant 0.000000e+00 : f32
    %251 = vector.broadcast %cst_68 : f32 to vector<8x128xf32>
    %252 = arith.maximumf %250, %251 : vector<8x128xf32>
    %c0_69 = arith.constant 0 : index
    %c0_70 = arith.constant 0 : index
    %253 = vector.load %arg13[%c0_69, %c0_70] : memref<128x128xf32, #tpu.memory_space<vmem>>, vector<128x128xf32>
    %cst_71 = arith.constant dense<0.000000e+00> : vector<8x128xf32>
    %254 = tpu.matmul %252, %253, %cst_71 {dimension_numbers = #tpu.dot_dimension_numbers<[1], [0], [0], [1], [0, 0, 1, 1], [], []>} : vector<8x128xf32>, vector<128x128xf32>, vector<8x128xf32> -> vector<8x128xf32>
    %c0_72 = arith.constant 0 : index
    %c0_73 = arith.constant 0 : index
    %255 = vector.load %arg14[%c0_72, %c0_73] : memref<1x128xf32, #tpu.memory_space<vmem>>, vector<1x128xf32>
    %256 = vector.broadcast %255 : vector<1x128xf32> to vector<8x128xf32>
    %257 = arith.addf %254, %256 : vector<8x128xf32>
    %cst_74 = arith.constant dense<0xFF800000> : vector<8xf32>
    %258 = vector.multi_reduction <maximumf>, %257, %cst_74 [1] : vector<8x128xf32> to vector<8xf32>
    %259 = vector.shape_cast %258 : vector<8xf32> to vector<8x1xf32>
    %260 = vector.broadcast %259 : vector<8x1xf32> to vector<8x128xf32>
    %261 = arith.subf %257, %260 : vector<8x128xf32>
    %262 = math.exp %261 : vector<8x128xf32>
    %cst_75 = arith.constant dense<0.000000e+00> : vector<8xf32>
    %263 = vector.multi_reduction <add>, %262, %cst_75 [1] : vector<8x128xf32> to vector<8xf32>
    %264 = vector.shape_cast %263 : vector<8xf32> to vector<8x1xf32>
    %265 = vector.broadcast %264 : vector<8x1xf32> to vector<8x128xf32>
    %266 = arith.divf %262, %265 : vector<8x128xf32>
    %c0_76 = arith.constant 0 : index
    %c0_77 = arith.constant 0 : index
    %267 = vector.load %arg15[%c0_76, %c0_77] : memref<8x128xf32, #tpu.memory_space<vmem>>, vector<8x128xf32>
    tpu.vector_store %arg15[%c0_76, %c0_77], %266 {strides = array<i32>} : memref<8x128xf32, #tpu.memory_space<vmem>>, vector<8x128xf32>,
    return
  }
}

</mosaic_0001>

<bundles_post_ra>
// kernel: baseline_lstm_forward.1
= control target key start
LH: loop header
LB: loop body
LE: loop exit
PB: predicated region body
PF: predicated region fallthrough
CT: control target
= control target key end

     0   :  { %20 = vsyncpa [#allocation4], 0  ;;  %s3431_s0 = inlined_call_operand.vmem [shape: s32[64,1], index: 0, kind: input, shape index: {}]   ;;  %s3432_s1 = inlined_call_operand.vmem [shape: s32[64,1], index: 1, kind: input, shape index: {}]   ;;  %s3433_s2 = inlined_call_operand.hbm [shape: f32[128,256], index: 2, kind: input, shape index: {}]   ;;  %s3434_s3 = inlined_call_operand.hbm [shape: f32[128,256], index: 3, kind: input, shape index: {}]   ;;  %s3435_s4 = inlined_call_operand.vmem [shape: f32[64,256], index: 4, kind: input, shape index: {}]   ;;  %s3436_s5 = inlined_call_operand.hbm [shape: f32[64,512], index: 5, kind: input, shape index: {}]   ;;  %s3437_s6 = inlined_call_operand.vmem [shape: f32[1,512], index: 6, kind: input, shape index: {}]   ;;  %s3438_s7 = inlined_call_operand.vmem [shape: f32[1,512], index: 7, kind: input, shape index: {}]   ;;  %s3439_s8 = inlined_call_operand.vmem [shape: f32[1,512], index: 8, kind: input, shape index: {}]   ;;  %s3440_s9 = inlined_call_operand.hbm [shape: f32[512,128], index: 9, kind: input, shape index: {}]   ;;  %s3441_s10 = inlined_call_operand.vmem [shape: f32[1,128], index: 10, kind: input, shape index: {}]   ;;  %s3442_s11 = inlined_call_operand.vmem [shape: f32[1,128], index: 11, kind: input, shape index: {}]   ;;  %s3443_s12 = inlined_call_operand.vmem [shape: f32[1,128], index: 12, kind: input, shape index: {}]   ;;  %s3444_s13 = inlined_call_operand.hbm [shape: f32[128,128], index: 13, kind: input, shape index: {}]   ;;  %s3445_s14 = inlined_call_operand.vmem [shape: f32[1,128], index: 14, kind: input, shape index: {}]   ;;  %s3446_s15 = inlined_call_operand.vmem [shape: f32[8,128], index: 15, kind: output, shape index: {}]  }
   0x1   :  { %21 = vsyncpa [#allocation6], 0 }
   0x2   :  { %22 = vsyncpa [#allocation9], 0  ;;  %s2878_s18 = smov [#allocation5]   ;;  %s2879_s20 = smov [#allocation8]  }
   0x3   :  { %s44_s19 = sshll.u32 %s2878_s18, 4  ;;  %s76_s21 = sshll.u32 %s2879_s20, 4  ;;  %s45_s19 = int_to_ptr.vmem [resolvable:$true] %s44_s19  ;;  %s2975_s21 = int_to_ptr.vmem [resolvable:$true] %s76_s21 }
   0x4   :  { %s2762_s24 = scalar_lea.hbm %s3434_s3, 4096 }
   0x5   :  { %p2763_p0 = scmp.ne.s32.totalorder %s3434_s3, %s2762_s24  ;;  %p2766_p1 = scmp.lt.u32.totalorder %s2762_s24, %s3434_s3 }
   0x7   :  { %p2768_p2 = pnand %p2766_p1, %p2763_p0 }
   0x9   :  { %2771 = shalt.err (!%p2768_p2)
}
   0xa   :  { %s2772_s29 = scalar_lea.vmem %s45_s19, 4096  ;;  %p2777_p4 = scmp.lt.s32.totalorder %s45_s19, %s45_s19 }
   0xb   :  { %p2773_p3 = scmp.ne.s32.totalorder %s45_s19, %s2772_s29  ;;  %p2778_p5 = scmp.lt.s32.totalorder %s2772_s29, %s2772_s29 }
   0xd   :  { %p2779_p6 = por %p2778_p5, %p2777_p4 }
   0xf   :  { %p2780_p7 = pnand %p2779_p6, %p2773_p3 }
  0x11   :  { %2783 = shalt.err (!%p2780_p7)
}
  0x12   :  { %s3447_s30 = smov 256   ;;  %s3448_s16 = smov 16  }
  0x13   :  { %50 = dma.hbm_to_vmem [thread:$0]  %s3434_s3, 4096, %s45_s19, [#allocation6], %s3447_s30, %s3447_s30, %s3448_s16  }
  0x14   :  { %s2784_s23 = scalar_lea.hbm %s3440_s9, 8192 }
  0x15   :  { %p2785_p8 = scmp.ne.s32.totalorder %s3440_s9, %s2784_s23  ;;  %p2788_p9 = scmp.lt.u32.totalorder %s2784_s23, %s3440_s9 }
  0x17   :  { %p2790_p10 = pnand %p2788_p9, %p2785_p8 }
  0x19   :  { %2793 = shalt.err (!%p2790_p10)
}
  0x1a   :  { %s2794_s28 = scalar_lea.vmem %s2975_s21, 8192  ;;  %p2799_p12 = scmp.lt.s32.totalorder %s2975_s21, %s2975_s21 }
  0x1b   :  { %p2795_p11 = scmp.ne.s32.totalorder %s2975_s21, %s2794_s28  ;;  %p2800_p13 = scmp.lt.s32.totalorder %s2794_s28, %s2794_s28 }
  0x1d   :  { %p2801_p0 = por %p2800_p13, %p2799_p12 }
  0x1f   :  { %p2802_p1 = pnand %p2801_p0, %p2795_p11 }
  0x21   :  { %2805 = shalt.err (!%p2802_p1)
}
  0x22   :  { %s2882_s3 = smov 128   ;;  %s2883_s19 = smov 8  }
  0x23   :  { %82 = dma.hbm_to_vmem [thread:$0]  %s3440_s9, 8192, %s2975_s21, [#allocation9], %s2882_s3, %s2882_s3, %s2883_s19  }
  0x24   :  { %s2884_s18 = smov [#allocation3]   ;;  %s2885_s22 = smov [#allocation7]  }
  0x25   :  { %s32_s20 = sshll.u32 %s2884_s18, 4  ;;  %s58_s23 = sshll.u32 %s2885_s22, 4  ;;  %s33_s20 = int_to_ptr.vmem [resolvable:$true] %s32_s20  ;;  %s3012_s23 = int_to_ptr.vmem [resolvable:$true] %s58_s23 }
  0x26   :  { %s2806_s26 = scalar_lea.hbm %s3433_s2, 4096 }
  0x27   :  { %p2807_p2 = scmp.ne.s32.totalorder %s3433_s2, %s2806_s26  ;;  %p2810_p3 = scmp.lt.u32.totalorder %s2806_s26, %s3433_s2 }
  0x29   :  { %p2812_p4 = pnand %p2810_p3, %p2807_p2 }
  0x2b   :  { %2815 = shalt.err (!%p2812_p4)
}
  0x2c   :  { %s2816_s9 = scalar_lea.vmem %s33_s20, 4096  ;;  %p2821_p6 = scmp.lt.s32.totalorder %s33_s20, %s33_s20 }
  0x2d   :  { %p2817_p5 = scmp.ne.s32.totalorder %s33_s20, %s2816_s9  ;;  %p2822_p7 = scmp.lt.s32.totalorder %s2816_s9, %s2816_s9 }
  0x2f   :  { %p2823_p8 = por %p2822_p7, %p2821_p6 }
  0x31   :  { %p2824_p9 = pnand %p2823_p8, %p2817_p5 }
  0x33   :  { %2827 = shalt.err (!%p2824_p9)
}
  0x34   :  { %s3449_s21 = smov 16   ;;  %s3450_s29 = smov 256  }
  0x35   :  { %38 = dma.hbm_to_vmem [thread:$0]  %s3433_s2, 4096, %s33_s20, [#allocation4], %s3450_s29, %s3450_s29, %s3449_s21  }
  0x36   :  { %s2828_s30 = scalar_lea.hbm %s3436_s5, 4096 }
  0x37   :  { %p2829_p10 = scmp.ne.s32.totalorder %s3436_s5, %s2828_s30  ;;  %p2832_p11 = scmp.lt.u32.totalorder %s2828_s30, %s3436_s5 }
  0x39   :  { %p2834_p12 = pnand %p2832_p11, %p2829_p10 }
  0x3b   :  { %2837 = shalt.err (!%p2834_p12)
}
  0x3c   :  { %s2838_s28 = scalar_lea.vmem %s3012_s23, 4096  ;;  %p2843_p0 = scmp.lt.s32.totalorder %s3012_s23, %s3012_s23 }
  0x3d   :  { %p2839_p13 = scmp.ne.s32.totalorder %s3012_s23, %s2838_s28  ;;  %p2844_p1 = scmp.lt.s32.totalorder %s2838_s28, %s2838_s28 }
  0x3f   :  { %p2845_p2 = por %p2844_p1, %p2843_p0 }
  0x41   :  { %p2846_p3 = pnand %p2845_p2, %p2839_p13 }
  0x43   :  { %2849 = shalt.err (!%p2846_p3)
}
  0x44   :  { %s2886_s2 = smov 512   ;;  %s2887_s20 = smov 32  }
  0x45   :  { %64 = dma.hbm_to_vmem [thread:$0]  %s3436_s5, 4096, %s3012_s23, [#allocation6], %s2886_s2, %s2886_s2, %s2887_s20  }
  0x46   :  { %s2888_s29 = smov [#allocation10]   ;;  %s2850_s24 = scalar_lea.hbm %s3444_s13, 2048 }
  0x47   :  { %s94_s17 = sshll.u32 %s2888_s29, 4  ;;  %p2851_p4 = scmp.ne.s32.totalorder %s3444_s13, %s2850_s24  ;;  %s95_s17 = int_to_ptr.vmem [resolvable:$true] %s94_s17 }
  0x48   :  { %p2854_p5 = scmp.lt.u32.totalorder %s2850_s24, %s3444_s13 }
  0x4a   :  { %p2856_p6 = pnand %p2854_p5, %p2851_p4 }
  0x4c   :  { %2859 = shalt.err (!%p2856_p6)
}
  0x4d   :  { %s2860_s27 = scalar_lea.vmem %s95_s17, 2048  ;;  %p2865_p8 = scmp.lt.s32.totalorder %s95_s17, %s95_s17 }
  0x4e   :  { %p2861_p7 = scmp.ne.s32.totalorder %s95_s17, %s2860_s27  ;;  %p2866_p9 = scmp.lt.s32.totalorder %s2860_s27, %s2860_s27 }
  0x50   :  { %p2867_p10 = por %p2866_p9, %p2865_p8 }
  0x52   :  { %p2868_p11 = pnand %p2867_p10, %p2861_p7 }
  0x54   :  { %2871 = shalt.err (!%p2868_p11)
}
  0x55   :  { %100 = dma.hbm_to_vmem [thread:$0]  %s3444_s13, 2048, %s95_s17, [#allocation9], %s2882_s3, %s2882_s3, %s2883_s19  }
  0x56   :  { %2872 = dma.done.wait [#allocation4], 4096  }
  0x57   :  { %2873 = vsyncadd [#allocation4], 4294963200 }
  0x58   :  { %2874 = dma.done.wait [#allocation6], 8192  }
  0x59   :  { %2875 = vsyncadd [#allocation6], 4294959104 }
  0x5a   :  { %2876 = dma.done.wait [#allocation9], 10240  }
  0x5b   :  { %2877 = vsyncadd [#allocation9], 4294957056  ;;  %v2889_v0 = vmov 0   ;;  %v122_v1 = vld [vmem:[%s3431_s0 + $0x10] sm:$0xff]  ;;  %v120_v2 = vld [vmem:[%s3431_s0] sm:$0xff]  ;;  %v2890_v5 = vmov 0.0  }
  0x5c   :  { %2651 = vset.pattern.permute.xlu1 %v2889_v0  ;;  %2650 = vset.pattern.permute.xlu0 %v2889_v0  ;;  %v123_v3 = vld [vmem:[%s3431_s0 + $0x18] sm:$0xff]  ;;  %v121_v4 = vld [vmem:[%s3431_s0 + $0x8] sm:$0xff]  ;;  %v232_v10 = vld [vmem:[#allocation3] sm:$0xff]  ;;  %vm563_vm11 = vcmask 523264  }
  0x5d   :  { %135 = vperm.xlu1 %2651, %v122_v1   ;;  %129 = vperm.xlu0 %2650, %v120_v2   ;;  %v233_v6 = vld [vmem:[#allocation3 + $0x8] sm:$0xff]  ;;  %v235_v7 = vld [vmem:[#allocation3 + $0x18] sm:$0xff]  ;;  %v234_v11 = vld [vmem:[#allocation3 + $0x10] sm:$0xff] }
  0x5e   :  { %473 = vmatprep.mubr.f32.mxu0 %v2890_v5  ;;  %360 = vmatprep.mubr.f32.mxu1 %v2890_v5  ;;  %v125_v8 = vld [vmem:[%s3431_s0 + $0x28] sm:$0xff]  ;;  %v2321_v9 = vpack.c.bf16 %v235_v7, %v233_v6  ;;  %v2323_v13 = vpack.c.bf16 %v234_v11, %v232_v10  ;;  %v239_v14 = vld [vmem:[#allocation3 + $0x38] sm:$0xff]  ;;  %v236_v15 = vld [vmem:[#allocation3 + $0x20] sm:$0xff] }
  0x5f   :  { %v237_v12 = vld [vmem:[#allocation3 + $0x28] sm:$0xff]  ;;  %v238_v16 = vld [vmem:[#allocation3 + $0x30] sm:$0xff]  ;;  %v124_v17 = vld [vmem:[%s3431_s0 + $0x20] sm:$0xff] }
  0x60   :  { %2322 = vmatprep.subr.bf16.mxu0 %v2321_v9  ;;  %v2325_v18 = vpack.c.bf16 %v239_v14, %v237_v12  ;;  %v241_v19 = vld [vmem:[#allocation3 + $0x48] sm:$0xff]  ;;  %v243_v20 = vld [vmem:[#allocation3 + $0x58] sm:$0xff]  ;;  %v2327_v21 = vpack.c.bf16 %v238_v16, %v236_v15  ;;  %v240_v23 = vld [vmem:[#allocation3 + $0x40] sm:$0xff] }
  0x61   :  { %138 = vperm.xlu1 %2651, %v123_v3   ;;  %132 = vperm.xlu0 %2650, %v121_v4   ;;  %v2329_v22 = vpack.c.bf16 %v243_v20, %v241_v19  ;;  %v242_v24 = vld [vmem:[#allocation3 + $0x50] sm:$0xff]  ;;  %v245_v25 = vld [vmem:[#allocation3 + $0x68] sm:$0xff]  ;;  %v247_v26 = vld [vmem:[#allocation3 + $0x78] sm:$0xff] }
  0x62   :  { %2324 = vmatpush1.bf16.msra.mxu0 %v2323_v13  ;;  %v265_v27 = vld [vmem:[#allocation5 + $0x8] sm:$0xff]  ;;  %v267_v28 = vld [vmem:[#allocation5 + $0x18] sm:$0xff]  ;;  %v126_v30 = vld [vmem:[%s3431_s0 + $0x30] sm:$0xff]  ;;  %v2331_v33 = vpack.c.bf16 %v242_v24, %v240_v23  ;;  %v2333_v37 = vpack.c.bf16 %v247_v26, %v245_v25 }
  0x63   :  { %2326 = vmatprep.subr.bf16.mxu0 %v2325_v18  ;;  %v127_v29 = vld [vmem:[%s3431_s0 + $0x38] sm:$0xff]  ;;  %v2289_v31 = vpack.c.bf16 %v267_v28, %v265_v27  ;;  %v264_v32 = vld [vmem:[#allocation5] sm:$0xff]  ;;  %v246_v35 = vld [vmem:[#allocation3 + $0x70] sm:$0xff] }
  0x64   :  { %v244_v34 = vld [vmem:[#allocation3 + $0x60] sm:$0xff]  ;;  %v266_v36 = vld [vmem:[#allocation5 + $0x10] sm:$0xff]  ;;  %v249_v38 = vld [vmem:[#allocation3 + $0x88] sm:$0xff] }
  0x65   :  { %144 = vperm.xlu1 %2651, %v125_v8   ;;  %141 = vperm.xlu0 %2650, %v124_v17   ;;  %v2291_v39 = vpack.c.bf16 %v266_v36, %v264_v32  ;;  %v269_v40 = vld [vmem:[#allocation5 + $0x28] sm:$0xff]  ;;  %v271_v41 = vld [vmem:[#allocation5 + $0x38] sm:$0xff]  ;;  %v268_v44 = vld [vmem:[#allocation5 + $0x20] sm:$0xff]  ;;  %v2335_v49 = vpack.c.bf16 %v246_v35, %v244_v34 }
  0x66   :  { %2328 = vmatpush1.bf16.msra.mxu0 %v2327_v21  ;;  %2290 = vmatprep.subr.bf16.mxu1 %v2289_v31  ;;  %v251_v42 = vld [vmem:[#allocation3 + $0x98] sm:$0xff]  ;;  %v2293_v43 = vpack.c.bf16 %v271_v41, %v269_v40  ;;  %v270_v45 = vld [vmem:[#allocation5 + $0x30] sm:$0xff]  ;;  %v176_v46 = vld [vmem:[%s3432_s1] sm:$0xff] }
  0x67   :  { %2330 = vmatprep.subr.bf16.mxu0 %v2329_v22  ;;  %2292 = vmatpush1.bf16.msra.mxu1 %v2291_v39  ;;  %v2295_v47 = vpack.c.bf16 %v270_v45, %v268_v44  ;;  %v273_v48 = vld [vmem:[#allocation5 + $0x48] sm:$0xff]  ;;  %v248_v50 = vld [vmem:[#allocation3 + $0x80] sm:$0xff]  ;;  %v250_v51 = vld [vmem:[#allocation3 + $0x90] sm:$0xff]  ;;  %v2337_v53 = vpack.c.bf16 %v251_v42, %v249_v38 }
  0x68   :  { %2294 = vmatprep.subr.bf16.mxu1 %v2293_v43  ;;  %v275_v52 = vld [vmem:[#allocation5 + $0x58] sm:$0xff]  ;;  %v253_v54 = vld [vmem:[#allocation3 + $0xa8] sm:$0xff]  ;;  %v272_v56 = vld [vmem:[#allocation5 + $0x40] sm:$0xff]  ;;  %v2339_v63 = vpack.c.bf16 %v250_v51, %v248_v50 }
  0x69   :  { %150 = vperm.xlu1 %2651, %v127_v29   ;;  %147 = vperm.xlu0 %2650, %v126_v30   ;;  %v2297_v55 = vpack.c.bf16 %v275_v52, %v273_v48  ;;  %v274_v57 = vld [vmem:[#allocation5 + $0x50] sm:$0xff]  ;;  %v255_v58 = vld [vmem:[#allocation3 + $0xb8] sm:$0xff]  ;;  %v277_v59 = vld [vmem:[#allocation5 + $0x68] sm:$0xff]  ;;  %v118_v48 = vlaneseq }
  0x6a   :  { %2332 = vmatpush1.bf16.msra.mxu0 %v2331_v33  ;;  %v279_v60 = vld [vmem:[#allocation5 + $0x78] sm:$0xff]  ;;  %v177_v61 = vld [vmem:[%s3432_s1 + $0x8] sm:$0xff]  ;;  %v2299_v62 = vpack.c.bf16 %v274_v57, %v272_v56  ;;  %v252_v0 = vld [vmem:[#allocation3 + $0xa0] sm:$0xff]  ;;  %v2341_v4 = vpack.c.bf16 %v255_v58, %v253_v54 }
  0x6b   :  { %2334 = vmatprep.subr.bf16.mxu0 %v2333_v37  ;;  %2296 = vmatpush1.bf16.msra.mxu1 %v2295_v47  ;;  %v2301_v1 = vpack.c.bf16 %v279_v60, %v277_v59  ;;  %v276_v2 = vld [vmem:[#allocation5 + $0x60] sm:$0xff]  ;;  %v278_v3 = vld [vmem:[#allocation5 + $0x70] sm:$0xff]  ;;  %v281_v7 = vld [vmem:[#allocation5 + $0x88] sm:$0xff]  ;;  %v3109_v51 = vand.u32 127, %v118_v48 }
  0x6c   :  { %2298 = vmatprep.subr.bf16.mxu1 %v2297_v55  ;;  %v254_v6 = vld [vmem:[#allocation3 + $0xb0] sm:$0xff]  ;;  %v283_v8 = vld [vmem:[#allocation5 + $0x98] sm:$0xff]  ;;  %v257_v9 = vld [vmem:[#allocation3 + $0xc8] sm:$0xff]  ;;  %v2303_v11 = vpack.c.bf16 %v278_v3, %v276_v2 }
  0x6d   :  { %185 = vperm.xlu0 %2650, %v176_v46   ;;  %v259_v10 = vld [vmem:[#allocation3 + $0xd8] sm:$0xff]  ;;  %v2343_v12 = vpack.c.bf16 %v254_v6, %v252_v0  ;;  %v256_v13 = vld [vmem:[#allocation3 + $0xc0] sm:$0xff]  ;;  %v2305_v14 = vpack.c.bf16 %v283_v8, %v281_v7  ;;  %v282_v16 = vld [vmem:[#allocation5 + $0x90] sm:$0xff] }
  0x6e   :  { %2336 = vmatpush1.bf16.msra.mxu0 %v2335_v49  ;;  %v280_v15 = vld [vmem:[#allocation5 + $0x80] sm:$0xff]  ;;  %v2345_v17 = vpack.c.bf16 %v259_v10, %v257_v9  ;;  %v258_v18 = vld [vmem:[#allocation3 + $0xd0] sm:$0xff]  ;;  %v285_v19 = vld [vmem:[#allocation5 + $0xa8] sm:$0xff] }
  0x6f   :  { %2338 = vmatprep.subr.bf16.mxu0 %v2337_v53  ;;  %2300 = vmatpush1.bf16.msra.mxu1 %v2299_v62  ;;  %v287_v20 = vld [vmem:[#allocation5 + $0xb8] sm:$0xff]  ;;  %v261_v21 = vld [vmem:[#allocation3 + $0xe8] sm:$0xff]  ;;  %v2307_v23 = vpack.c.bf16 %v282_v16, %v280_v15  ;;  %v2347_v24 = vpack.c.bf16 %v258_v18, %v256_v13  ;;  %v260_v25 = vld [vmem:[#allocation3 + $0xe0] sm:$0xff] }
  0x70   :  { %2302 = vmatprep.subr.bf16.mxu1 %v2301_v1  ;;  %v263_v22 = vld [vmem:[#allocation3 + $0xf8] sm:$0xff]  ;;  %v2309_v26 = vpack.c.bf16 %v287_v20, %v285_v19  ;;  %v284_v27 = vld [vmem:[#allocation5 + $0xa0] sm:$0xff]  ;;  %v286_v28 = vld [vmem:[#allocation5 + $0xb0] sm:$0xff] }
  0x71   :  { %188 = vperm.xlu0 %2650, %v177_v61   ;;  %v2349_v29 = vpack.c.bf16 %v263_v22, %v261_v21  ;;  %v262_v30 = vld [vmem:[#allocation3 + $0xf0] sm:$0xff]  ;;  %v289_v31 = vld [vmem:[#allocation5 + $0xc8] sm:$0xff]  ;;  %v291_v32 = vld [vmem:[#allocation5 + $0xd8] sm:$0xff]  ;;  %v2311_v35 = vpack.c.bf16 %v286_v28, %v284_v27  ;;  %v2891_v61 = vmov 1.0  }
  0x72   :  { %2340 = vmatpush1.bf16.msra.mxu0 %v2339_v63  ;;  %v539_v33 = vld [vmem:[%s3435_s4 + $0x8] sm:$0xff]  ;;  %v541_v34 = vld [vmem:[%s3435_s4 + $0x18] sm:$0xff]  ;;  %v2351_v36 = vpack.c.bf16 %v262_v30, %v260_v25  ;;  %v2313_v37 = vpack.c.bf16 %v291_v32, %v289_v31  ;;  %v288_v38 = vld [vmem:[#allocation5 + $0xc0] sm:$0xff] }
  0x73   :  { %2342 = vmatprep.subr.bf16.mxu0 %v2341_v4  ;;  %2304 = vmatpush1.bf16.msra.mxu1 %v2303_v11  ;;  %v290_v39 = vld [vmem:[#allocation5 + $0xd0] sm:$0xff]  ;;  %v3099_v40 = vpack.c.bf16 %v541_v34, %v539_v33  ;;  %v293_v41 = vld [vmem:[#allocation5 + $0xe8] sm:$0xff]  ;;  %v295_v42 = vld [vmem:[#allocation5 + $0xf8] sm:$0xff]  ;;  %v3210_v33 = vadd.s32 128, %v3109_v51 }
  0x74   :  { %2306 = vmatprep.subr.bf16.mxu1 %v2305_v14  ;;  %v2315_v43 = vpack.c.bf16 %v290_v39, %v288_v38  ;;  %v2317_v44 = vpack.c.bf16 %v295_v42, %v293_v41  ;;  %v292_v45 = vld [vmem:[#allocation5 + $0xe0] sm:$0xff]  ;;  %v294_v46 = vld [vmem:[#allocation5 + $0xf0] sm:$0xff]  ;;  %v543_v52 = vld [vmem:[%s3435_s4 + $0x28] sm:$0xff] }
  0x75   :  { %v2319_v47 = vpack.c.bf16 %v294_v46, %v292_v45  ;;  %v538_v49 = vld [vmem:[%s3435_s4] sm:$0xff]  ;;  %v540_v50 = vld [vmem:[%s3435_s4 + $0x10] sm:$0xff]  ;;  %v545_v53 = vld [vmem:[%s3435_s4 + $0x38] sm:$0xff]  ;;  %vm558_vm10 = vcmp.lt.s32.totalorder %v3210_v33, 192 }
  0x76   :  { %2344 = vmatpush1.bf16.msra.mxu0 %v2343_v12  ;;  %v3117_v54 = vpack.c.bf16 %v540_v50, %v538_v49  ;;  %v3119_v56 = vpack.c.bf16 %v545_v53, %v543_v52  ;;  %v542_v57 = vld [vmem:[%s3435_s4 + $0x20] sm:$0xff]  ;;  %v544_v58 = vld [vmem:[%s3435_s4 + $0x30] sm:$0xff]  ;;  %v547_v59 = vld [vmem:[%s3435_s4 + $0x48] sm:$0xff] }
  0x77   :  { %2346 = vmatprep.subr.bf16.mxu0 %v2345_v17  ;;  %2308 = vmatpush1.bf16.msra.mxu1 %v2307_v23  ;;  %v549_v60 = vld [vmem:[%s3435_s4 + $0x58] sm:$0xff]  ;;  %v3137_v62 = vpack.c.bf16 %v544_v58, %v542_v57  ;;  %v546_v1 = vld [vmem:[%s3435_s4 + $0x40] sm:$0xff]  ;;  %v548_v2 = vld [vmem:[%s3435_s4 + $0x50] sm:$0xff] }
  0x78   :  { %2310 = vmatprep.subr.bf16.mxu1 %v2309_v26  ;;  %v3140_v0 = vpack.c.bf16 %v549_v60, %v547_v59  ;;  %v551_v3 = vld [vmem:[%s3435_s4 + $0x68] sm:$0xff]  ;;  %v553_v4 = vld [vmem:[%s3435_s4 + $0x78] sm:$0xff]  ;;  %v3159_v7 = vpack.c.bf16 %v548_v2, %v546_v1  ;;  %v550_v10 = vld [vmem:[%s3435_s4 + $0x60] sm:$0xff] }
  0x79   :  { %v3162_v9 = vpack.c.bf16 %v553_v4, %v551_v3  ;;  %v552_v11 = vld [vmem:[%s3435_s4 + $0x70] sm:$0xff]  ;;  %s2892_s4 = smov 64  }
  0x7a   :  { %2348 = vmatpush1.bf16.msra.mxu0 %v2347_v24  ;;  %v3173_v12 = vpack.c.bf16 %v552_v11, %v550_v10  ;;  %v178_v45 = vld [vmem:[%s3432_s1 + $0x10] sm:$0xff] }
  0x7b   :  { %2350 = vmatprep.subr.bf16.mxu0 %v2349_v29  ;;  %2312 = vmatpush1.bf16.msra.mxu1 %v2311_v35 }
  0x7c   :  { %2314 = vmatprep.subr.bf16.mxu1 %v2313_v37 }
  0x7e   :  { %2352 = vmatpush1.bf16.msra.mxu0 %v2351_v36 }
  0x7f   :  { %2354 = vmatprep.subr.bf16.mxu0 %v3099_v40  ;;  %2316 = vmatpush1.bf16.msra.mxu1 %v2315_v43 }
  0x80   :  { %2318 = vmatprep.subr.bf16.mxu1 %v2317_v44 }
  0x83   :  { %2320 = vmatpush1.bf16.msra.mxu1 %v2319_v47 }
  0xdc   :  { %v130_v55 = vpop.permute.xlu0 %129  ;;  %v136_v6 = vpop.permute.xlu1 %135 }
  0xdd   :  { %vm152_vm0 = vcmp.eq.s32.totalorder %v3109_v51, %v130_v55  ;;  %vm154_vm2 = vcmp.eq.s32.totalorder %v3109_v51, %v136_v6 }
  0xde   :  { %2129 = vmatmul.mubr.msk.f32.vlgmr.msra.gmra.mrb[0].mxu0 %vm152_vm0, %v2891_v61 }
  0xdf   :  { %2356 = vmatpush1.bf16.msra.mxu0 %v3117_v54  ;;  %479 = vmatprep.mubr.f32.mxu0 %v2890_v5 }
  0xe0   :  { %v133_v63 = vpop.permute.xlu0 %132  ;;  %2358 = vmatprep.subr.bf16.mxu0 %v3119_v56  ;;  %v139_v13 = vpop.permute.xlu1 %138 }
  0xe1   :  { %vm153_vm1 = vcmp.eq.s32.totalorder %v3109_v51, %v133_v63  ;;  %vm155_vm3 = vcmp.eq.s32.totalorder %v3109_v51, %v139_v13 }
  0xe2   :  { %2130 = vmatmul.mubr.msk.f32.gmra.mrb[2].mxu0 %vm153_vm1, %v2891_v61 }
  0xe3   :  { %485 = vmatprep.mubr.f32.mxu0 %v2890_v5  ;;  %2360 = vmatpush1.bf16.msra.mxu0 %v3137_v62 }
  0xe4   :  { %v142_v8 = vpop.permute.xlu0 %141  ;;  %2362 = vmatprep.subr.bf16.mxu0 %v3140_v0  ;;  %v145_v16 = vpop.permute.xlu1 %144 }
  0xe5   :  { %vm156_vm4 = vcmp.eq.s32.totalorder %v3109_v51, %v142_v8  ;;  %vm157_vm6 = vcmp.eq.s32.totalorder %v3109_v51, %v145_v16 }
  0xe6   :  { %2131 = vmatmul.mubr.msk.f32.gmra.mrb[4].mxu0 %vm154_vm2, %v2891_v61 }
  0xe7   :  { %491 = vmatprep.mubr.f32.mxu0 %v2890_v5  ;;  %2364 = vmatpush1.bf16.msra.mxu0 %v3159_v7 }
  0xe8   :  { %v148_v14 = vpop.permute.xlu0 %147  ;;  %2366 = vmatprep.subr.bf16.mxu0 %v3162_v9  ;;  %v151_v18 = vpop.permute.xlu1 %150 }
  0xe9   :  { %vm158_vm8 = vcmp.eq.s32.totalorder %v3109_v51, %v148_v14  ;;  %vm159_vm9 = vcmp.eq.s32.totalorder %v3109_v51, %v151_v18 }
  0xea   :  { %2132 = vmatmul.mubr.msk.f32.gmra.mrb[6].mxu0 %vm155_vm3, %v2891_v61  ;;  %vm2894_vm3 = vmmov 0  }
  0xeb   :  { %497 = vmatprep.mubr.f32.mxu0 %v2890_v5  ;;  %2368 = vmatpush1.bf16.msra.mxu0 %v3173_v12 }
  0xec   :  { %v186_v15 = vpop.permute.xlu0 %185  ;;  %2370 = vmatprep.subr.bf16.mxu0 %v3099_v40 }
  0xed   :  { %vm208_vm5 = vcmp.eq.s32.totalorder %v3109_v51, %v186_v15 }
  0xee   :  { %2121 = vmatmul.mubr.msk.f32.vlgmr.msra.gmra.mrb[0].mxu1 %vm208_vm5, %v2891_v61  ;;  %2133 = vmatmul.mubr.msk.f32.gmra.mrb[8].mxu0 %vm156_vm4, %v2891_v61 }
  0xef   :  { %366 = vmatprep.mubr.f32.mxu1 %v2890_v5  ;;  %503 = vmatprep.mubr.f32.mxu0 %v2890_v5 }
  0xf0   :  { %v189_v17 = vpop.permute.xlu0 %188 }
  0xf1   :  { %vm209_vm7 = vcmp.eq.s32.totalorder %v3109_v51, %v189_v17  ;;  %v179_v17 = vld [vmem:[%s3432_s1 + $0x18] sm:$0xff] }
  0xf2   :  { %2122 = vmatmul.mubr.msk.f32.gmra.mrb[2].mxu1 %vm209_vm7, %v2891_v61  ;;  %2134 = vmatmul.mubr.msk.f32.gmra.mrb[10].mxu0 %vm157_vm6, %v2891_v61 }
  0xf3   :  { %509 = vmatprep.mubr.f32.mxu0 %v2890_v5  ;;  %372 = vmatprep.mubr.f32.mxu1 %v2890_v5 }
  0xf6   :  { %2135 = vmatmul.mubr.msk.f32.gmra.mrb[12].mxu0 %vm158_vm8, %v2891_v61 }
  0xf7   :  { %515 = vmatprep.mubr.f32.mxu0 %v2890_v5 }
  0xfa   :  { %2136 = vmatmul.mubr.msk.f32.gmra.mrb[14].mxu0 %vm159_vm9, %v2891_v61 }
  0xfb   :  { %631 = vmatprep.mubr.f32.mxu0 %v2890_v5 }
  0xfe   :  { %632 = vmatmul.mubr.f32.vlgmr.msra.gmra.mrb[0].mxu0 %v2890_v5 }
  0xff   :  { %2372 = vmatpush1.bf16.msra.mxu0 %v3117_v54  ;;  %736 = vmatprep.mubr.f32.mxu0 %v2890_v5 }
 0x100   :  { %2374 = vmatprep.subr.bf16.mxu0 %v3119_v56 }
 0x103   :  { %2376 = vmatpush1.bf16.msra.mxu0 %v3137_v62 }
 0x104   :  { %2378 = vmatprep.subr.bf16.mxu0 %v3140_v0 }
 0x107   :  { %2380 = vmatpush1.bf16.msra.mxu0 %v3159_v7 }
 0x108   :  { %2382 = vmatprep.subr.bf16.mxu0 %v3162_v9 }
 0x10b   :  { %2384 = vmatpush1.bf16.msra.mxu0 %v3173_v12 }
 0x10c   :  { %2386 = vmatprep.subr.bf16.mxu0 %v3099_v40 }
 0x1c1   :  { %v362_v19 = vpop.f32.mrb[0].mxu1 }
 0x1c2   :  { %v364_v20 = vpop.f32.mrb[1].mxu1 }
 0x1c5   :  { %v368_v21 = vpop.f32.mrb[2].mxu1 }
 0x1c6   :  { %v370_v22 = vpop.f32.mrb[3].mxu1 }
 0x1d1   :  { %v633_v23 = vpop.f32.mrb[0].mxu0 }
 0x1d2   :  { %v2601_v24 = vadd.f32 %v633_v23, %v362_v19  ;;  %v635_v25 = vpop.f32.mrb[1].mxu0 }
 0x1d3   :  { %v2602_v26 = vadd.f32 %v635_v25, %v364_v20 }
 0x1d4   :  { %v2137_v27 = vmul.f32 -1.442695, %v2601_v24 }
 0x1d5   :  { %v2138_v28 = vmul.f32 -1.442695, %v2602_v26 }
 0x1d6   :  { %2652 = vpow2.f32 %v2137_v27 }
 0x1d7   :  { %2654 = vpow2.f32 %v2138_v28 }
 0x1d8   :  { %2656 = vtanh.f32 %v2602_v26 }
 0x1e0   :  { %v2653_v29 = vpop.eup %2652 }
 0x1e1   :  { %v2655_v30 = vpop.eup %2654  ;;  %v646_v31 = vadd.f32 1.0, %v2653_v29 }
 0x1e2   :  { %v647_v32 = vadd.f32 1.0, %v2655_v30  ;;  %v2657_v34 = vpop.eup %2656 }
 0x1e4   :  { %2658 = vrcp.f32 %v647_v32 }
 0x1e5   :  { %2660 = vrcp.f32 %v646_v31 }
 0x1ee   :  { %v2659_v35 = vpop.eup %2658 }
 0x1ef   :  { %v2661_v36 = vpop.eup %2660  ;;  %v655_v37 = vsel %vm558_vm10, %v2657_v34, %v2659_v35 }
 0x1f0   :  { %v657_v38 = vmul.f32 %v2661_v36, %v655_v37  ;;  %v656_v39 = vmul.f32 0.0, %v2661_v36 }
 0x1f2   :  { %659 = vrot.lane.b32.xlu1 %v657_v38, %s2892_s4 }
 0x264   :  { %v660_v41 = vpop.permute.xlu1 %659 }
 0x265   :  { %v662_v42 = vadd.f32 %v660_v41, %v656_v39 }
 0x267   :  { %2662 = vtanh.f32 %v662_v42 }
 0x271   :  { %v2663_v43 = vpop.eup %2662 }
 0x272   :  { %v664_v44 = vmul.f32 %v2663_v43, %v655_v37 }
 0x274   :  { %668 = vrot.lane.b32.xlu1 %v664_v44, %s2892_s4  ;;  %v180_v44 = vld [vmem:[%s3432_s1 + $0x20] sm:$0xff] }
 0x278   :  { %191 = vperm.xlu1 %2651, %v178_v45  }
 0x2e6   :  { %v669_v46 = vpop.permute.xlu1 %668 }
 0x2e7   :  { %2139 = vmatmul.mubr.msk.f32.vlgmr.msra.gmra.mrb[2].mxu0 %vm563_vm11, %v669_v46 }
 0x2e8   :  { %2388 = vmatpush1.bf16.msra.mxu0 %v3117_v54  ;;  %841 = vmatprep.mubr.f32.mxu0 %v2890_v5 }
 0x2e9   :  { %2390 = vmatprep.subr.bf16.mxu0 %v3119_v56 }
 0x2ec   :  { %2392 = vmatpush1.bf16.msra.mxu0 %v3137_v62 }
 0x2ed   :  { %2394 = vmatprep.subr.bf16.mxu0 %v3140_v0 }
 0x2f0   :  { %2396 = vmatpush1.bf16.msra.mxu0 %v3159_v7 }
 0x2f1   :  { %2398 = vmatprep.subr.bf16.mxu0 %v3162_v9 }
 0x2f4   :  { %2400 = vmatpush1.bf16.msra.mxu0 %v3173_v12 }
 0x2f5   :  { %2402 = vmatprep.subr.bf16.mxu0 %v3099_v40 }
 0x2f7   :  { %v192_v47 = vpop.permute.xlu1 %191 }
 0x2f8   :  { %vm210_vm12 = vcmp.eq.s32.totalorder %v3109_v51, %v192_v47 }
 0x2f9   :  { %2123 = vmatmul.mubr.msk.f32.gmra.mrb[4].mxu1 %vm210_vm12, %v2891_v61 }
 0x2fa   :  { %378 = vmatprep.mubr.f32.mxu1 %v2890_v5 }
 0x3ba   :  { %v738_v49 = vpop.f32.mrb[2].mxu0 }
 0x3bb   :  { %v2603_v50 = vadd.f32 %v738_v49, %v368_v21  ;;  %v740_v52 = vpop.f32.mrb[3].mxu0 }
 0x3bc   :  { %v2604_v53 = vadd.f32 %v740_v52, %v370_v22 }
 0x3bd   :  { %v2140_v55 = vmul.f32 -1.442695, %v2603_v50 }
 0x3be   :  { %v2141_v57 = vmul.f32 -1.442695, %v2604_v53 }
 0x3bf   :  { %2664 = vpow2.f32 %v2140_v55 }
 0x3c0   :  { %2666 = vpow2.f32 %v2141_v57 }
 0x3c1   :  { %2668 = vtanh.f32 %v2604_v53 }
 0x3c9   :  { %v2665_v58 = vpop.eup %2664 }
 0x3ca   :  { %v2667_v59 = vpop.eup %2666  ;;  %v751_v60 = vadd.f32 1.0, %v2665_v58 }
 0x3cb   :  { %v752_v63 = vadd.f32 1.0, %v2667_v59  ;;  %v2669_v3 = vpop.eup %2668 }
 0x3cc   :  { %v374_v1 = vpop.f32.mrb[4].mxu1 }
 0x3cd   :  { %2670 = vrcp.f32 %v752_v63  ;;  %v376_v2 = vpop.f32.mrb[5].mxu1 }
 0x3ce   :  { %2672 = vrcp.f32 %v751_v60 }
 0x3d7   :  { %v2671_v4 = vpop.eup %2670 }
 0x3d8   :  { %v2673_v6 = vpop.eup %2672  ;;  %v760_v8 = vsel %vm558_vm10, %v2669_v3, %v2671_v4 }
 0x3d9   :  { %v762_v10 = vmul.f32 %v2673_v6, %v760_v8  ;;  %v761_v11 = vmul.f32 %v2673_v6, %v662_v42 }
 0x3db   :  { %764 = vrot.lane.b32.xlu0 %v762_v10, %s2892_s4 }
 0x44d   :  { %v765_v13 = vpop.permute.xlu0 %764 }
 0x44e   :  { %v767_v14 = vadd.f32 %v765_v13, %v761_v11 }
 0x450   :  { %2674 = vtanh.f32 %v767_v14 }
 0x45a   :  { %v2675_v15 = vpop.eup %2674 }
 0x45b   :  { %v769_v16 = vmul.f32 %v2675_v15, %v760_v8 }
 0x45d   :  { %773 = vrot.lane.b32.xlu0 %v769_v16, %s2892_s4  ;;  %v181_v16 = vld [vmem:[%s3432_s1 + $0x28] sm:$0xff] }
 0x461   :  { %194 = vperm.xlu0 %2650, %v179_v17  }
 0x4cf   :  { %v774_v18 = vpop.permute.xlu0 %773 }
 0x4d0   :  { %2142 = vmatmul.mubr.msk.f32.vlgmr.msra.gmra.mrb[4].mxu0 %vm563_vm11, %v774_v18 }
 0x4d1   :  { %2404 = vmatpush1.bf16.msra.mxu0 %v3117_v54  ;;  %946 = vmatprep.mubr.f32.mxu0 %v2890_v5 }
 0x4d2   :  { %2406 = vmatprep.subr.bf16.mxu0 %v3119_v56 }
 0x4d5   :  { %2408 = vmatpush1.bf16.msra.mxu0 %v3137_v62 }
 0x4d6   :  { %2410 = vmatprep.subr.bf16.mxu0 %v3140_v0 }
 0x4d9   :  { %2412 = vmatpush1.bf16.msra.mxu0 %v3159_v7 }
 0x4da   :  { %2414 = vmatprep.subr.bf16.mxu0 %v3162_v9 }
 0x4dd   :  { %2416 = vmatpush1.bf16.msra.mxu0 %v3173_v12 }
 0x4de   :  { %2418 = vmatprep.subr.bf16.mxu0 %v3099_v40 }
 0x4e0   :  { %v195_v19 = vpop.permute.xlu0 %194 }
 0x4e1   :  { %vm211_vm13 = vcmp.eq.s32.totalorder %v3109_v51, %v195_v19 }
 0x4e2   :  { %2124 = vmatmul.mubr.msk.f32.gmra.mrb[6].mxu1 %vm211_vm13, %v2891_v61 }
 0x4e3   :  { %384 = vmatprep.mubr.f32.mxu1 %v2890_v5 }
 0x5a3   :  { %v843_v20 = vpop.f32.mrb[4].mxu0 }
 0x5a4   :  { %v2605_v21 = vadd.f32 %v843_v20, %v374_v1  ;;  %v845_v22 = vpop.f32.mrb[5].mxu0 }
 0x5a5   :  { %v2606_v23 = vadd.f32 %v845_v22, %v376_v2 }
 0x5a6   :  { %v2143_v24 = vmul.f32 -1.442695, %v2605_v21 }
 0x5a7   :  { %v2144_v25 = vmul.f32 -1.442695, %v2606_v23 }
 0x5a8   :  { %2676 = vpow2.f32 %v2143_v24 }
 0x5a9   :  { %2678 = vpow2.f32 %v2144_v25 }
 0x5aa   :  { %2680 = vtanh.f32 %v2606_v23 }
 0x5b2   :  { %v2677_v26 = vpop.eup %2676 }
 0x5b3   :  { %v2679_v27 = vpop.eup %2678  ;;  %v856_v28 = vadd.f32 1.0, %v2677_v26 }
 0x5b4   :  { %v857_v29 = vadd.f32 1.0, %v2679_v27  ;;  %v2681_v32 = vpop.eup %2680 }
 0x5b5   :  { %v380_v30 = vpop.f32.mrb[6].mxu1 }
 0x5b6   :  { %2682 = vrcp.f32 %v857_v29  ;;  %v382_v31 = vpop.f32.mrb[7].mxu1 }
 0x5b7   :  { %2684 = vrcp.f32 %v856_v28 }
 0x5c0   :  { %v2683_v34 = vpop.eup %2682 }
 0x5c1   :  { %v2685_v35 = vpop.eup %2684  ;;  %v865_v36 = vsel %vm558_vm10, %v2681_v32, %v2683_v34 }
 0x5c2   :  { %v867_v37 = vmul.f32 %v2685_v35, %v865_v36  ;;  %v866_v38 = vmul.f32 %v2685_v35, %v767_v14 }
 0x5c4   :  { %869 = vrot.lane.b32.xlu1 %v867_v37, %s2892_s4 }
 0x636   :  { %v870_v39 = vpop.permute.xlu1 %869 }
 0x637   :  { %v872_v41 = vadd.f32 %v870_v39, %v866_v38 }
 0x639   :  { %2686 = vtanh.f32 %v872_v41 }
 0x643   :  { %v2687_v42 = vpop.eup %2686 }
 0x644   :  { %v874_v43 = vmul.f32 %v2687_v42, %v865_v36 }
 0x646   :  { %878 = vrot.lane.b32.xlu1 %v874_v43, %s2892_s4  ;;  %v182_v43 = vld [vmem:[%s3432_s1 + $0x30] sm:$0xff] }
 0x64a   :  { %197 = vperm.xlu1 %2651, %v180_v44  }
 0x6b8   :  { %v879_v45 = vpop.permute.xlu1 %878 }
 0x6b9   :  { %2145 = vmatmul.mubr.msk.f32.vlgmr.msra.gmra.mrb[6].mxu0 %vm563_vm11, %v879_v45 }
 0x6ba   :  { %2420 = vmatpush1.bf16.msra.mxu0 %v3117_v54  ;;  %1051 = vmatprep.mubr.f32.mxu0 %v2890_v5 }
 0x6bb   :  { %2422 = vmatprep.subr.bf16.mxu0 %v3119_v56 }
 0x6be   :  { %2424 = vmatpush1.bf16.msra.mxu0 %v3137_v62 }
 0x6bf   :  { %2426 = vmatprep.subr.bf16.mxu0 %v3140_v0 }
 0x6c2   :  { %2428 = vmatpush1.bf16.msra.mxu0 %v3159_v7 }
 0x6c3   :  { %2430 = vmatprep.subr.bf16.mxu0 %v3162_v9 }
 0x6c6   :  { %2432 = vmatpush1.bf16.msra.mxu0 %v3173_v12 }
 0x6c7   :  { %2434 = vmatprep.subr.bf16.mxu0 %v3099_v40 }
 0x6c9   :  { %v198_v46 = vpop.permute.xlu1 %197 }
 0x6ca   :  { %vm212_vm14 = vcmp.eq.s32.totalorder %v3109_v51, %v198_v46 }
 0x6cb   :  { %2125 = vmatmul.mubr.msk.f32.gmra.mrb[8].mxu1 %vm212_vm14, %v2891_v61 }
 0x6cc   :  { %390 = vmatprep.mubr.f32.mxu1 %v2890_v5 }
 0x78c   :  { %v948_v47 = vpop.f32.mrb[6].mxu0 }
 0x78d   :  { %v2607_v49 = vadd.f32 %v948_v47, %v380_v30  ;;  %v950_v50 = vpop.f32.mrb[7].mxu0 }
 0x78e   :  { %v2608_v52 = vadd.f32 %v950_v50, %v382_v31 }
 0x78f   :  { %v2146_v53 = vmul.f32 -1.442695, %v2607_v49 }
 0x790   :  { %v2147_v55 = vmul.f32 -1.442695, %v2608_v52 }
 0x791   :  { %2688 = vpow2.f32 %v2146_v53 }
 0x792   :  { %2690 = vpow2.f32 %v2147_v55 }
 0x793   :  { %2692 = vtanh.f32 %v2608_v52 }
 0x79b   :  { %v2689_v57 = vpop.eup %2688 }
 0x79c   :  { %v2691_v58 = vpop.eup %2690  ;;  %v961_v59 = vadd.f32 1.0, %v2689_v57 }
 0x79d   :  { %v962_v60 = vadd.f32 1.0, %v2691_v58  ;;  %v2693_v2 = vpop.eup %2692 }
 0x79e   :  { %v386_v63 = vpop.f32.mrb[8].mxu1 }
 0x79f   :  { %2694 = vrcp.f32 %v962_v60  ;;  %v388_v1 = vpop.f32.mrb[9].mxu1 }
 0x7a0   :  { %2696 = vrcp.f32 %v961_v59 }
 0x7a9   :  { %v2695_v3 = vpop.eup %2694 }
 0x7aa   :  { %v2697_v4 = vpop.eup %2696  ;;  %v970_v6 = vsel %vm558_vm10, %v2693_v2, %v2695_v3 }
 0x7ab   :  { %v972_v8 = vmul.f32 %v2697_v4, %v970_v6  ;;  %v971_v10 = vmul.f32 %v2697_v4, %v872_v41 }
 0x7ad   :  { %974 = vrot.lane.b32.xlu0 %v972_v8, %s2892_s4 }
 0x81f   :  { %v975_v11 = vpop.permute.xlu0 %974 }
 0x820   :  { %v977_v13 = vadd.f32 %v975_v11, %v971_v10 }
 0x822   :  { %2698 = vtanh.f32 %v977_v13 }
 0x82c   :  { %v2699_v14 = vpop.eup %2698 }
 0x82d   :  { %v979_v15 = vmul.f32 %v2699_v14, %v970_v6  ;;  %v183_v14 = vld [vmem:[%s3432_s1 + $0x38] sm:$0xff] }
 0x82f   :  { %983 = vrot.lane.b32.xlu0 %v979_v15, %s2892_s4 }
 0x833   :  { %200 = vperm.xlu0 %2650, %v181_v16  }
 0x8a1   :  { %v984_v17 = vpop.permute.xlu0 %983 }
 0x8a2   :  { %2148 = vmatmul.mubr.msk.f32.vlgmr.msra.gmra.mrb[8].mxu0 %vm563_vm11, %v984_v17 }
 0x8a3   :  { %2436 = vmatpush1.bf16.msra.mxu0 %v3117_v54  ;;  %1156 = vmatprep.mubr.f32.mxu0 %v2890_v5 }
 0x8a4   :  { %2438 = vmatprep.subr.bf16.mxu0 %v3119_v56 }
 0x8a7   :  { %2440 = vmatpush1.bf16.msra.mxu0 %v3137_v62 }
 0x8a8   :  { %2442 = vmatprep.subr.bf16.mxu0 %v3140_v0 }
 0x8ab   :  { %2444 = vmatpush1.bf16.msra.mxu0 %v3159_v7 }
 0x8ac   :  { %2446 = vmatprep.subr.bf16.mxu0 %v3162_v9 }
 0x8af   :  { %2448 = vmatpush1.bf16.msra.mxu0 %v3173_v12 }
 0x8b0   :  { %2450 = vmatprep.subr.bf16.mxu0 %v3099_v40 }
 0x8b2   :  { %v201_v18 = vpop.permute.xlu0 %200 }
 0x8b3   :  { %vm213_vm15 = vcmp.eq.s32.totalorder %v3109_v51, %v201_v18 }
 0x8b4   :  { %2126 = vmatmul.mubr.msk.f32.gmra.mrb[10].mxu1 %vm213_vm15, %v2891_v61 }
 0x8b5   :  { %396 = vmatprep.mubr.f32.mxu1 %v2890_v5 }
 0x975   :  { %v1053_v19 = vpop.f32.mrb[8].mxu0 }
 0x976   :  { %v2609_v20 = vadd.f32 %v1053_v19, %v386_v63  ;;  %v1055_v21 = vpop.f32.mrb[9].mxu0 }
 0x977   :  { %v2610_v22 = vadd.f32 %v1055_v21, %v388_v1 }
 0x978   :  { %v2149_v23 = vmul.f32 -1.442695, %v2609_v20 }
 0x979   :  { %v2150_v24 = vmul.f32 -1.442695, %v2610_v22 }
 0x97a   :  { %2700 = vpow2.f32 %v2149_v23 }
 0x97b   :  { %2702 = vpow2.f32 %v2150_v24 }
 0x97c   :  { %2704 = vtanh.f32 %v2610_v22 }
 0x984   :  { %v2701_v25 = vpop.eup %2700 }
 0x985   :  { %v2703_v26 = vpop.eup %2702  ;;  %v1066_v27 = vadd.f32 1.0, %v2701_v25 }
 0x986   :  { %v1067_v28 = vadd.f32 1.0, %v2703_v26  ;;  %v2705_v31 = vpop.eup %2704 }
 0x987   :  { %v392_v29 = vpop.f32.mrb[10].mxu1 }
 0x988   :  { %2706 = vrcp.f32 %v1067_v28  ;;  %v394_v30 = vpop.f32.mrb[11].mxu1 }
 0x989   :  { %2708 = vrcp.f32 %v1066_v27 }
 0x992   :  { %v2707_v32 = vpop.eup %2706 }
 0x993   :  { %v2709_v34 = vpop.eup %2708  ;;  %v1075_v35 = vsel %vm558_vm10, %v2705_v31, %v2707_v32 }
 0x994   :  { %v1077_v36 = vmul.f32 %v2709_v34, %v1075_v35  ;;  %v1076_v37 = vmul.f32 %v2709_v34, %v977_v13 }
 0x996   :  { %1079 = vrot.lane.b32.xlu1 %v1077_v36, %s2892_s4 }
 0xa08   :  { %v1080_v38 = vpop.permute.xlu1 %1079 }
 0xa09   :  { %v1082_v39 = vadd.f32 %v1080_v38, %v1076_v37 }
 0xa0b   :  { %2710 = vtanh.f32 %v1082_v39 }
 0xa15   :  { %v2711_v41 = vpop.eup %2710 }
 0xa16   :  { %v1084_v42 = vmul.f32 %v2711_v41, %v1075_v35 }
 0xa18   :  { %1088 = vrot.lane.b32.xlu1 %v1084_v42, %s2892_s4 }
 0xa1c   :  { %203 = vperm.xlu1 %2651, %v182_v43  }
 0xa8a   :  { %v1089_v44 = vpop.permute.xlu1 %1088 }
 0xa8b   :  { %2151 = vmatmul.mubr.msk.f32.vlgmr.msra.gmra.mrb[10].mxu0 %vm563_vm11, %v1089_v44 }
 0xa8c   :  { %2452 = vmatpush1.bf16.msra.mxu0 %v3117_v54  ;;  %1261 = vmatprep.mubr.f32.mxu0 %v2890_v5 }
 0xa8d   :  { %2454 = vmatprep.subr.bf16.mxu0 %v3119_v56 }
 0xa90   :  { %2456 = vmatpush1.bf16.msra.mxu0 %v3137_v62 }
 0xa91   :  { %2458 = vmatprep.subr.bf16.mxu0 %v3140_v0 }
 0xa94   :  { %2460 = vmatpush1.bf16.msra.mxu0 %v3159_v7 }
 0xa95   :  { %2462 = vmatprep.subr.bf16.mxu0 %v3162_v9 }
 0xa98   :  { %2464 = vmatpush1.bf16.msra.mxu0 %v3173_v12 }
 0xa99   :  { %2466 = vmatprep.subr.bf16.mxu0 %v3099_v40 }
 0xa9b   :  { %v204_v45 = vpop.permute.xlu1 %203 }
 0xa9c   :  { %vm214_vm0 = vcmp.eq.s32.totalorder %v3109_v51, %v204_v45 }
 0xa9d   :  { %2127 = vmatmul.mubr.msk.f32.gmra.mrb[12].mxu1 %vm214_vm0, %v2891_v61 }
 0xa9e   :  { %402 = vmatprep.mubr.f32.mxu1 %v2890_v5 }
 0xb5e   :  { %v1158_v46 = vpop.f32.mrb[10].mxu0 }
 0xb5f   :  { %v2611_v47 = vadd.f32 %v1158_v46, %v392_v29  ;;  %v1160_v49 = vpop.f32.mrb[11].mxu0 }
 0xb60   :  { %v2612_v50 = vadd.f32 %v1160_v49, %v394_v30  ;;  %v1406_v49 = vld [vmem:[#allocation7 + $0x8] sm:$0xff] }
 0xb61   :  { %v2152_v52 = vmul.f32 -1.442695, %v2611_v47 }
 0xb62   :  { %v2153_v53 = vmul.f32 -1.442695, %v2612_v50 }
 0xb63   :  { %2712 = vpow2.f32 %v2152_v52  ;;  %v1405_v52 = vld [vmem:[#allocation7] sm:$0xff] }
 0xb64   :  { %2714 = vpow2.f32 %v2153_v53 }
 0xb65   :  { %2716 = vtanh.f32 %v2612_v50  ;;  %v1410_v50 = vld [vmem:[#allocation7 + $0x28] sm:$0xff] }
 0xb66   :  { %v2481_v53 = vpack.c.bf16 %v1410_v50, %v1406_v49  ;;  %v1748_v50 = vld [vmem:[#allocation8 + $0x10] sm:$0xff] }
 0xb68   :  { %2482 = vmatprep.subr.bf16.mxu1 %v2481_v53 }
 0xb6d   :  { %v2713_v55 = vpop.eup %2712 }
 0xb6e   :  { %v2715_v57 = vpop.eup %2714  ;;  %v1171_v58 = vadd.f32 1.0, %v2713_v55  ;;  %v1409_v55 = vld [vmem:[#allocation7 + $0x20] sm:$0xff] }
 0xb6f   :  { %v1172_v59 = vadd.f32 1.0, %v2715_v57  ;;  %v2717_v63 = vpop.eup %2716  ;;  %v1414_v57 = vld [vmem:[#allocation7 + $0x48] sm:$0xff] }
 0xb70   :  { %v398_v40 = vpop.f32.mrb[12].mxu1 }
 0xb71   :  { %2718 = vrcp.f32 %v1172_v59  ;;  %v400_v60 = vpop.f32.mrb[13].mxu1  ;;  %v2483_v59 = vpack.c.bf16 %v1409_v55, %v1405_v52  ;;  %v1749_v52 = vld [vmem:[#allocation8 + $0x18] sm:$0xff]  ;;  %v1766_v55 = vld [vmem:[#allocation8 + $0xa0] sm:$0xff] }
 0xb72   :  { %2720 = vrcp.f32 %v1171_v58  ;;  %v1418_v58 = vld [vmem:[#allocation7 + $0x68] sm:$0xff]  ;;  %v2519_v53 = vpack.c.bf16 %v1749_v52, %v1748_v50 }
 0xb73   :  { %2484 = vmatpush1.bf16.msra.mxu1 %v2483_v59  ;;  %v1750_v59 = vld [vmem:[#allocation8 + $0x20] sm:$0xff] }
 0xb7b   :  { %v2719_v1 = vpop.eup %2718 }
 0xb7c   :  { %v2721_v2 = vpop.eup %2720  ;;  %v1180_v3 = vsel %vm558_vm10, %v2717_v63, %v2719_v1  ;;  %v1417_v63 = vld [vmem:[#allocation7 + $0x60] sm:$0xff]  ;;  %v1422_v1 = vld [vmem:[#allocation7 + $0x88] sm:$0xff] }
 0xb7d   :  { %v1182_v4 = vmul.f32 %v2721_v2, %v1180_v3  ;;  %v1181_v6 = vmul.f32 %v2721_v2, %v1082_v39  ;;  %v1426_v2 = vld [vmem:[#allocation7 + $0xa8] sm:$0xff] }
 0xb7f   :  { %1184 = vrot.lane.b32.xlu0 %v1182_v4, %s2892_s4  ;;  %v1421_v4 = vld [vmem:[#allocation7 + $0x80] sm:$0xff] }
 0xbf1   :  { %v1185_v8 = vpop.permute.xlu0 %1184 }
 0xbf2   :  { %v1187_v10 = vadd.f32 %v1185_v8, %v1181_v6  ;;  %v1425_v6 = vld [vmem:[#allocation7 + $0xa0] sm:$0xff]  ;;  %v1430_v8 = vld [vmem:[#allocation7 + $0xc8] sm:$0xff] }
 0xbf4   :  { %2722 = vtanh.f32 %v1187_v10 }
 0xbfe   :  { %v2723_v11 = vpop.eup %2722 }
 0xbff   :  { %v1189_v13 = vmul.f32 %v2723_v11, %v1180_v3  ;;  %v2489_v3 = vpack.c.bf16 %v1426_v2, %v1422_v1  ;;  %v2491_v11 = vpack.c.bf16 %v1425_v6, %v1421_v4  ;;  %v1769_v1 = vld [vmem:[#allocation8 + $0xb8] sm:$0xff]  ;;  %v1770_v6 = vld [vmem:[#allocation8 + $0xc0] sm:$0xff] }
 0xc01   :  { %1193 = vrot.lane.b32.xlu0 %v1189_v13, %s2892_s4 }
 0xc05   :  { %206 = vperm.xlu0 %2650, %v183_v14   ;;  %v1429_v14 = vld [vmem:[#allocation7 + $0xc0] sm:$0xff] }
 0xc73   :  { %v1194_v15 = vpop.permute.xlu0 %1193 }
 0xc74   :  { %2154 = vmatmul.mubr.msk.f32.vlgmr.msra.gmra.mrb[12].mxu0 %vm563_vm11, %v1194_v15  ;;  %v1433_v15 = vld [vmem:[#allocation7 + $0xe0] sm:$0xff] }
 0xc75   :  { %2468 = vmatpush1.bf16.msra.mxu0 %v3117_v54  ;;  %1366 = vmatprep.mubr.f32.mxu0 %v2890_v5 }
 0xc76   :  { %2470 = vmatprep.subr.bf16.mxu0 %v3119_v56 }
 0xc79   :  { %2472 = vmatpush1.bf16.msra.mxu0 %v3137_v62 }
 0xc7a   :  { %2474 = vmatprep.subr.bf16.mxu0 %v3140_v0 }
 0xc7d   :  { %2476 = vmatpush1.bf16.msra.mxu0 %v3159_v7 }
 0xc7e   :  { %2478 = vmatprep.subr.bf16.mxu0 %v3162_v9 }
 0xc81   :  { %2480 = vmatpush1.bf16.msra.mxu0 %v3173_v12 }
 0xc84   :  { %v207_v16 = vpop.permute.xlu0 %206 }
 0xc85   :  { %vm215_vm1 = vcmp.eq.s32.totalorder %v3109_v51, %v207_v16  ;;  %v1408_v16 = vld [vmem:[#allocation7 + $0x18] sm:$0xff] }
 0xc86   :  { %2128 = vmatmul.mubr.msk.f32.gmra.mrb[14].mxu1 %vm215_vm1, %v2891_v61 }
 0xc87   :  { %1528 = vmatprep.mubr.f32.mxu1 %v2890_v5 }
 0xd47   :  { %v1263_v54 = vpop.f32.mrb[12].mxu0 }
 0xd48   :  { %v2613_v17 = vadd.f32 %v1263_v54, %v398_v40  ;;  %v1265_v56 = vpop.f32.mrb[13].mxu0  ;;  %v2485_v40 = vpack.c.bf16 %v1418_v58, %v1414_v57  ;;  %v1412_v54 = vld [vmem:[#allocation7 + $0x38] sm:$0xff]  ;;  %v1767_v57 = vld [vmem:[#allocation8 + $0xa8] sm:$0xff] }
 0xd49   :  { %v2614_v18 = vadd.f32 %v1265_v56, %v400_v60  ;;  %v1413_v60 = vld [vmem:[#allocation7 + $0x40] sm:$0xff]  ;;  %v2497_v56 = vpack.c.bf16 %v1412_v54, %v1408_v16  ;;  %v2521_v58 = vpack.c.bf16 %v1767_v57, %v1766_v55  ;;  %v1773_v16 = vld [vmem:[#allocation8 + $0xd8] sm:$0xff] }
 0xd4a   :  { %v2155_v62 = vmul.f32 -1.442695, %v2613_v17  ;;  %v2487_v33 = vpack.c.bf16 %v1417_v63, %v1413_v60  ;;  %2486 = vmatprep.subr.bf16.mxu1 %v2485_v40  ;;  %v2495_v17 = vpack.c.bf16 %v1433_v15, %v1429_v14  ;;  %v1751_v40 = vld [vmem:[#allocation8 + $0x28] sm:$0xff]  ;;  %v1768_v63 = vld [vmem:[#allocation8 + $0xb0] sm:$0xff] }
 0xd4b   :  { %v2156_v19 = vmul.f32 -1.442695, %v2614_v18  ;;  %v2523_v60 = vpack.c.bf16 %v1751_v40, %v1750_v59  ;;  %v2525_v2 = vpack.c.bf16 %v1769_v1, %v1768_v63  ;;  %v1772_v15 = vld [vmem:[#allocation8 + $0xd0] sm:$0xff] }
 0xd4c   :  { %2724 = vpow2.f32 %v2155_v62  ;;  %2488 = vmatpush1.bf16.msra.mxu1 %v2487_v33  ;;  %v1752_v33 = vld [vmem:[#allocation8 + $0x30] sm:$0xff]  ;;  %v2533_v54 = vpack.c.bf16 %v1773_v16, %v1772_v15 }
 0xd4d   :  { %2726 = vpow2.f32 %v2156_v19  ;;  %2490 = vmatprep.subr.bf16.mxu1 %v2489_v3  ;;  %v1753_v3 = vld [vmem:[#allocation8 + $0x38] sm:$0xff] }
 0xd4e   :  { %2728 = vtanh.f32 %v2614_v18  ;;  %v2527_v4 = vpack.c.bf16 %v1753_v3, %v1752_v33 }
 0xd50   :  { %2492 = vmatpush1.bf16.msra.mxu1 %v2491_v11  ;;  %v1754_v11 = vld [vmem:[#allocation8 + $0x40] sm:$0xff] }
 0xd56   :  { %v2725_v0 = vpop.eup %2724 }
 0xd57   :  { %v2727_v7 = vpop.eup %2726  ;;  %v1276_v9 = vadd.f32 1.0, %v2725_v0 }
 0xd58   :  { %v1277_v20 = vadd.f32 1.0, %v2727_v7  ;;  %v2729_v61 = vpop.eup %2728 }
 0xd59   :  { %v404_v12 = vpop.f32.mrb[14].mxu1 }
 0xd5a   :  { %2730 = vrcp.f32 %v1277_v20  ;;  %v406_v51 = vpop.f32.mrb[15].mxu1  ;;  %v1411_v20 = vld [vmem:[#allocation7 + $0x30] sm:$0xff] }
 0xd5b   :  { %2732 = vrcp.f32 %v1276_v9  ;;  %v1407_v9 = vld [vmem:[#allocation7 + $0x10] sm:$0xff] }
 0xd64   :  { %v2731_v21 = vpop.eup %2730 }
 0xd65   :  { %v2733_v22 = vpop.eup %2732  ;;  %v1285_v23 = vsel %vm558_vm10, %v2729_v61, %v2731_v21  ;;  %v2499_v61 = vpack.c.bf16 %v1411_v20, %v1407_v9  ;;  %v1759_v9 = vld [vmem:[#allocation8 + $0x68] sm:$0xff] }
 0xd66   :  { %v1287_v24 = vmul.f32 %v2733_v22, %v1285_v23  ;;  %v1286_v25 = vmul.f32 %v2733_v22, %v1187_v10  ;;  %v1434_v10 = vld [vmem:[#allocation7 + $0xe8] sm:$0xff]  ;;  %v1415_v22 = vld [vmem:[#allocation7 + $0x50] sm:$0xff] }
 0xd67   :  { %v2493_v13 = vpack.c.bf16 %v1434_v10, %v1430_v8  ;;  %v1771_v8 = vld [vmem:[#allocation8 + $0xc8] sm:$0xff] }
 0xd68   :  { %1289 = vrot.lane.b32.xlu1 %v1287_v24, %s2892_s4  ;;  %v2529_v10 = vpack.c.bf16 %v1771_v8, %v1770_v6 }
 0xd69   :  { %2494 = vmatprep.subr.bf16.mxu1 %v2493_v13  ;;  %v1755_v13 = vld [vmem:[#allocation8 + $0x48] sm:$0xff] }
 0xd6a   :  { %2496 = vmatpush1.bf16.msra.mxu1 %v2495_v17  ;;  %v2531_v14 = vpack.c.bf16 %v1755_v13, %v1754_v11  ;;  %v1756_v17 = vld [vmem:[#allocation8 + $0x50] sm:$0xff] }
 0xd6b   :  { %2498 = vmatprep.subr.bf16.mxu1 %v2497_v56  ;;  %v1757_v56 = vld [vmem:[#allocation8 + $0x58] sm:$0xff] }
 0xdda   :  { %v1290_v26 = vpop.permute.xlu1 %1289 }
 0xddb   :  { %v3335_v27 = vadd.f32 %v1290_v26, %v1286_v25  ;;  %v1424_v25 = vld [vmem:[#allocation7 + $0x98] sm:$0xff] }
 0xddc   :  { %v1428_v26 = vld [vmem:[#allocation7 + $0xb8] sm:$0xff] }
 0xddd   :  { %2734 = vtanh.f32 %v3335_v27 }
 0xde7   :  { %v2735_v28 = vpop.eup %2734 }
 0xde8   :  { %v1294_v29 = vmul.f32 %v2735_v28, %v1285_v23  ;;  %v1419_v23 = vld [vmem:[#allocation7 + $0x70] sm:$0xff]  ;;  %v2505_v28 = vpack.c.bf16 %v1428_v26, %v1424_v25  ;;  %v1795_v25 = vld [vmem:[#allocation8 + $0x188] sm:$0xff] }
 0xdea   :  { %1298 = vrot.lane.b32.xlu1 %v1294_v29, %s2892_s4  ;;  %v1423_v29 = vld [vmem:[#allocation7 + $0x90] sm:$0xff] }
 0xe5c   :  { %v1299_v30 = vpop.permute.xlu1 %1298 }
 0xe5d   :  { %2157 = vmatmul.mubr.msk.f32.vlgmr.msra.gmra.mrb[14].mxu0 %vm563_vm11, %v1299_v30  ;;  %v1427_v30 = vld [vmem:[#allocation7 + $0xb0] sm:$0xff] }
 0xf30   :  { %v1368_v31 = vpop.f32.mrb[14].mxu0 }
 0xf31   :  { %v2615_v32 = vadd.f32 %v1368_v31, %v404_v12  ;;  %v1370_v34 = vpop.f32.mrb[15].mxu0  ;;  %v1416_v12 = vld [vmem:[#allocation7 + $0x58] sm:$0xff] }
 0xf32   :  { %v2616_v35 = vadd.f32 %v1370_v34, %v406_v51  ;;  %v1420_v51 = vld [vmem:[#allocation7 + $0x78] sm:$0xff]  ;;  %v2507_v34 = vpack.c.bf16 %v1427_v30, %v1423_v29  ;;  %v1437_v29 = vld [vmem:[%s3437_s6] sm:$0xf] }
 0xf33   :  { %v2158_v36 = vmul.f32 -1.442695, %v2615_v32  ;;  %v2501_v21 = vpack.c.bf16 %v1420_v51, %v1416_v12  ;;  %v1432_v31 = vld [vmem:[#allocation7 + $0xd8] sm:$0xff]  ;;  %v1776_v12 = vld [vmem:[#allocation8 + $0xf0] sm:$0xff] }
 0xf34   :  { %v2159_v37 = vmul.f32 -1.442695, %v2616_v35  ;;  %v1436_v32 = vld [vmem:[#allocation7 + $0xf8] sm:$0xff] }
 0xf35   :  { %2736 = vpow2.f32 %v2158_v36  ;;  %v1431_v36 = vld [vmem:[#allocation7 + $0xd0] sm:$0xff]  ;;  %v1777_v51 = vld [vmem:[#allocation8 + $0xf8] sm:$0xff] }
 0xf36   :  { %2738 = vpow2.f32 %v2159_v37  ;;  %v1435_v37 = vld [vmem:[#allocation7 + $0xf0] sm:$0xff] }
 0xf37   :  { %2740 = vtanh.f32 %v2616_v35  ;;  %v2509_v35 = vpack.c.bf16 %v1436_v32, %v1432_v31 }
 0xf3f   :  { %v2737_v38 = vpop.eup %2736 }
 0xf40   :  { %v2739_v39 = vpop.eup %2738  ;;  %v1381_v41 = vadd.f32 1.0, %v2737_v38  ;;  %v2511_v38 = vpack.c.bf16 %v1435_v37, %v1431_v36 }
 0xf41   :  { %v1382_v42 = vadd.f32 1.0, %v2739_v39  ;;  %v2741_v43 = vpop.eup %2740  ;;  %v1762_v39 = vld [vmem:[#allocation8 + $0x80] sm:$0xff] }
 0xf43   :  { %2742 = vrcp.f32 %v1382_v42 }
 0xf44   :  { %2744 = vrcp.f32 %v1381_v41  ;;  %v1763_v41 = vld [vmem:[#allocation8 + $0x88] sm:$0xff] }
 0xf45   :  { %v2513_v42 = vpack.c.bf16 %v1763_v41, %v1762_v39 }
 0xf4d   :  { %v2743_v44 = vpop.eup %2742 }
 0xf4e   :  { %v2745_v45 = vpop.eup %2744  ;;  %v1390_v46 = vsel %vm558_vm10, %v2741_v43, %v2743_v44  ;;  %v1746_v43 = vld [vmem:[#allocation8] sm:$0xff]  ;;  %v1747_v44 = vld [vmem:[#allocation8 + $0x8] sm:$0xff] }
 0xf4f   :  { %v1392_v47 = vmul.f32 %v2745_v45, %v1390_v46  ;;  %v1391_v18 = vmul.f32 %v2745_v45, %v3335_v27  ;;  %v2503_v27 = vpack.c.bf16 %v1419_v23, %v1415_v22  ;;  %v2515_v45 = vpack.c.bf16 %v1747_v44, %v1746_v43  ;;  %v1761_v22 = vld [vmem:[#allocation8 + $0x78] sm:$0xff] }
 0xf51   :  { %1394 = vrot.lane.b32.xlu0 %v1392_v47, %s2892_s4  ;;  %v1765_v47 = vld [vmem:[#allocation8 + $0x98] sm:$0xff] }
 0xfc3   :  { %v1395_v62 = vpop.permute.xlu0 %1394 }
 0xfc4   :  { %v1397_v19 = vadd.f32 %v1395_v62, %v1391_v18  ;;  %v2535_v18 = vpack.c.bf16 %v1757_v56, %v1756_v17  ;;  %v1774_v62 = vld [vmem:[#allocation8 + $0xe0] sm:$0xff] }
 0xfc6   :  { %2746 = vtanh.f32 %v1397_v19  ;;  %v1775_v19 = vld [vmem:[#allocation8 + $0xe8] sm:$0xff] }
 0xfd0   :  { %v2747_v0 = vpop.eup %2746 }
 0xfd1   :  { %v1399_v7 = vmul.f32 %v2747_v0, %v1390_v46  ;;  %v1764_v46 = vld [vmem:[#allocation8 + $0x90] sm:$0xff]  ;;  %v2537_v0 = vpack.c.bf16 %v1775_v19, %v1774_v62 }
 0xfd2   :  { %v2517_v49 = vpack.c.bf16 %v1765_v47, %v1764_v46 }
 0xfd3   :  { %1460 = vrot.lane.b32.xlu1 %v1399_v7, %s2892_s4  ;;  %v1758_v7 = vld [vmem:[#allocation8 + $0x60] sm:$0xff] }
 0xfd4   :  { %v2539_v20 = vpack.c.bf16 %v1759_v9, %v1758_v7 }
0x1045   :  { %v1461_v24 = vpop.permute.xlu1 %1460 }
0x1046   :  { %2161 = vmatmul.mubr.msk.f32.vlgmr.msra.gmra.mrb[16].mxu1 %vm563_vm11, %v1461_v24 }
0x1047   :  { %2500 = vmatpush1.bf16.msra.mxu1 %v2499_v61  ;;  %1599 = vmatprep.mubr.f32.mxu1 %v2890_v5  ;;  %v2541_v61 = vpack.c.bf16 %v1777_v51, %v1776_v12 }
0x1048   :  { %2502 = vmatprep.subr.bf16.mxu1 %v2501_v21  ;;  %v1760_v21 = vld [vmem:[#allocation8 + $0x70] sm:$0xff] }
0x1049   :  { %v2543_v23 = vpack.c.bf16 %v1761_v22, %v1760_v21 }
0x104b   :  { %2504 = vmatpush1.bf16.msra.mxu1 %v2503_v27  ;;  %v1401_v27 = vshrl.u32 %v118_v48, 7 }
0x104c   :  { %2506 = vmatprep.subr.bf16.mxu1 %v2505_v28 }
0x104d   :  { %v3349_v28 = vsub.s32 0, %v1401_v27  ;;  %v3354_v30 = vsub.s32 1, %v1401_v27  ;;  %vm1402_vm2 = vcmp.lt.s32.totalorder %v1401_v27, 2  ;;  %v3363_v46 = vsub.s32 2, %v1401_v27 }
0x104f   :  { %2508 = vmatpush1.bf16.msra.mxu1 %v2507_v34  ;;  %v1442_v31 = vrot.slane %v1437_v29, %v3349_v28  ;;  %v1446_v32 = vrot.slane %v1437_v29, %v3354_v30  ;;  %v3359_v34 = vsel %vm1402_vm2, 1.0, %v2890_v5  ;;  %v1450_v55 = vrot.slane %v1437_v29, %v3363_v46 }
0x1050   :  { %2510 = vmatprep.subr.bf16.mxu1 %v2509_v35 }
0x1053   :  { %2512 = vmatpush1.bf16.msra.mxu1 %v2511_v38 }
0x1054   :  { %2514 = vmatprep.subr.bf16.mxu1 %v2513_v42 }
0x1056   :  { %2162 = vmatmul.mubr.msk.f32.vlgmr.msra.gmra.mrb[18].mxu1 %vm563_vm11, %v1461_v24  ;;  %v1794_v24 = vld [vmem:[#allocation8 + $0x180] sm:$0xff] }
0x1057   :  { %2516 = vmatpush3.bf16.msra.mxu1 %v2515_v45  ;;  %v2545_v26 = vpack.c.bf16 %v1795_v25, %v1794_v24 }
0x1058   :  { %2518 = vmatprep.subr.bf16.mxu1 %v2517_v49  ;;  %v3365_v49 = vsub.s32 3, %v1401_v27 }
0x105b   :  { %2520 = vmatpush3.bf16.msra.mxu1 %v2519_v53 }
0x105c   :  { %2522 = vmatprep.subr.bf16.mxu1 %v2521_v58  ;;  %v1454_v58 = vrot.slane %v1437_v29, %v3365_v49 }
0x105f   :  { %2524 = vmatpush3.bf16.msra.mxu1 %v2523_v60 }
0x1060   :  { %2526 = vmatprep.subr.bf16.mxu1 %v2525_v2 }
0x1063   :  { %2528 = vmatpush3.bf16.msra.mxu1 %v2527_v4 }
0x1064   :  { %2530 = vmatprep.subr.bf16.mxu1 %v2529_v10 }
0x1067   :  { %2532 = vmatpush3.bf16.msra.mxu1 %v2531_v14 }
0x1068   :  { %2534 = vmatprep.subr.bf16.mxu1 %v2533_v54 }
0x106b   :  { %2536 = vmatpush3.bf16.msra.mxu1 %v2535_v18 }
0x106c   :  { %2538 = vmatprep.subr.bf16.mxu1 %v2537_v0 }
0x106f   :  { %2540 = vmatpush3.bf16.msra.mxu1 %v2539_v20 }
0x1070   :  { %2542 = vmatprep.subr.bf16.mxu1 %v2541_v61 }
0x1073   :  { %2544 = vmatpush3.bf16.msra.mxu1 %v2543_v23 }
0x1074   :  { %2546 = vmatprep.subr.bf16.mxu1 %v2545_v26 }
0x1119   :  { %v1530_v35 = vpop.f32.mrb[16].mxu1 }
0x111a   :  { %v1531_v36 = vadd.f32 %v1530_v35, %v1442_v31  ;;  %v1532_v37 = vpop.f32.mrb[17].mxu1 }
0x111b   :  { %v1533_v48 = vadd.f32 %v1532_v37, %v1446_v32 }
0x111c   :  { %v1608_v38 = vmul.f32 %v3359_v34, %v1531_v36 }
0x111d   :  { %v1609_v39 = vmul.f32 %v3359_v34, %v1533_v48 }
0x111e   :  { %v1612_v41 = vrot.slane %v1608_v38, 4 }
0x111f   :  { %v1618_v42 = vrot.slane %v1609_v39, 4 }
0x1120   :  { %v1613_v43 = vadd.f32 %v1612_v41, %v1608_v38 }
0x1121   :  { %v1619_v44 = vadd.f32 %v1618_v42, %v1609_v39 }
0x1122   :  { %v1614_v45 = vrot.slane %v1613_v43, 2 }
0x1123   :  { %v1620_v47 = vrot.slane %v1619_v44, 2 }
0x1124   :  { %v1615_v50 = vadd.f32 %v1614_v45, %v1613_v43 }
0x1125   :  { %v1621_v52 = vadd.f32 %v1620_v47, %v1619_v44 }
0x1126   :  { %v1616_v53 = vrot.slane %v1615_v50, 1 }
0x1127   :  { %v1622_v57 = vrot.slane %v1621_v52, 1 }
0x1128   :  { %v1617_v59 = vadd.f32 %v1616_v53, %v1615_v50 }
0x1129   :  { %v1623_v40 = vadd.f32 %v1622_v57, %v1621_v52  ;;  %v1601_v60 = vpop.f32.mrb[18].mxu1 }
0x112a   :  { %v1636_v63 = vmul.f32 0.5, %v1617_v59  ;;  %v1602_v1 = vadd.f32 %v1601_v60, %v1450_v55  ;;  %v1603_v2 = vpop.f32.mrb[19].mxu1  ;;  %v3387_v59 = vld [vmem:[%s3438_s7] sm:$0xf] }
0x112b   :  { %v1637_v33 = vmul.f32 0.5, %v1623_v40  ;;  %v1604_v3 = vadd.f32 %v1603_v2, %v1454_v58 }
0x112c   :  { %v1640_v4 = vsub.f32 %v1531_v36, %v1636_v63  ;;  %v1610_v6 = vmul.f32 %v3359_v34, %v1602_v1  ;;  %v3392_v63 = vld [vmem:[%s3439_s8] sm:$0xf] }
0x112d   :  { %v3370_v8 = vsub.f32 %v1533_v48, %v1637_v33  ;;  %v1611_v10 = vmul.f32 %v3359_v34, %v1604_v3 }
0x112e   :  { %v1644_v11 = vmul.f32 %v3359_v34, %v1640_v4  ;;  %v1624_v13 = vrot.slane %v1610_v6, 4 }
0x112f   :  { %v1645_v14 = vmul.f32 %v3359_v34, %v3370_v8  ;;  %v1630_v15 = vrot.slane %v1611_v10, 4 }
0x1130   :  { %v1648_v16 = vmul.f32 %v1644_v11, %v1644_v11  ;;  %v1625_v54 = vadd.f32 %v1624_v13, %v1610_v6  ;;  %v1700_v6 = vrot.slane %v3387_v59, %v3354_v30 }
0x1131   :  { %v1649_v17 = vmul.f32 %v1645_v14, %v1645_v14  ;;  %v1631_v56 = vadd.f32 %v1630_v15, %v1611_v10  ;;  %v1721_v14 = vrot.slane %v3392_v63, %v3349_v28 }
0x1132   :  { %v1652_v18 = vrot.slane %v1648_v16, 4  ;;  %v1626_v62 = vrot.slane %v1625_v54, 2 }
0x1133   :  { %v1658_v19 = vrot.slane %v1649_v17, 4  ;;  %v1632_v0 = vrot.slane %v1631_v56, 2 }
0x1134   :  { %v1653_v7 = vadd.f32 %v1652_v18, %v1648_v16  ;;  %v1627_v9 = vadd.f32 %v1626_v62, %v1625_v54  ;;  %v1725_v16 = vrot.slane %v3392_v63, %v3354_v30  ;;  %v1798_v30 = vld [vmem:[#allocation8 + $0x1a0] sm:$0xff] }
0x1135   :  { %v1659_v20 = vadd.f32 %v1658_v19, %v1649_v17  ;;  %v1633_v12 = vadd.f32 %v1632_v0, %v1631_v56  ;;  %v1778_v0 = vld [vmem:[#allocation8 + $0x100] sm:$0xff] }
0x1136   :  { %v1654_v51 = vrot.slane %v1653_v7, 2  ;;  %v1628_v61 = vrot.slane %v1627_v9, 1 }
0x1137   :  { %v1660_v21 = vrot.slane %v1659_v20, 2  ;;  %v1634_v22 = vrot.slane %v1633_v12, 1 }
0x1138   :  { %v1655_v23 = vadd.f32 %v1654_v51, %v1653_v7  ;;  %v1629_v24 = vadd.f32 %v1628_v61, %v1627_v9  ;;  %v1779_v7 = vld [vmem:[#allocation8 + $0x108] sm:$0xff] }
0x1139   :  { %v1661_v25 = vadd.f32 %v1660_v21, %v1659_v20  ;;  %v1635_v26 = vadd.f32 %v1634_v22, %v1633_v12  ;;  %v1796_v20 = vld [vmem:[#allocation8 + $0x190] sm:$0xff]  ;;  %v1781_v22 = vld [vmem:[#allocation8 + $0x118] sm:$0xff] }
0x113a   :  { %v1656_v27 = vrot.slane %v1655_v23, 1  ;;  %v1638_v29 = vmul.f32 0.5, %v1629_v24  ;;  %v1780_v21 = vld [vmem:[#allocation8 + $0x110] sm:$0xff] }
0x113b   :  { %v1662_v31 = vrot.slane %v1661_v25, 1  ;;  %v1639_v32 = vmul.f32 0.5, %v1635_v26 }
0x113c   :  { %v1657_v35 = vadd.f32 %v1656_v27, %v1655_v23  ;;  %v3376_v36 = vsub.f32 %v1602_v1, %v1638_v29  ;;  %v1696_v1 = vrot.slane %v3387_v59, %v3349_v28  ;;  %v2547_v28 = vpack.c.bf16 %v1779_v7, %v1778_v0  ;;  %v1799_v23 = vld [vmem:[#allocation8 + $0x1a8] sm:$0xff]  ;;  %v1782_v27 = vld [vmem:[#allocation8 + $0x120] sm:$0xff]  ;;  %v1792_v0 = vld [vmem:[#allocation8 + $0x170] sm:$0xff] }
0x113d   :  { %v1663_v37 = vadd.f32 %v1662_v31, %v1661_v25  ;;  %v3378_v48 = vsub.f32 %v1604_v3, %v1639_v32  ;;  %v2551_v25 = vpack.c.bf16 %v1781_v22, %v1780_v21  ;;  %v2553_v26 = vpack.c.bf16 %v1799_v23, %v1798_v30  ;;  %v1783_v29 = vld [vmem:[#allocation8 + $0x128] sm:$0xff]  ;;  %v1800_v31 = vld [vmem:[#allocation8 + $0x1b0] sm:$0xff]  ;;  %v1801_v32 = vld [vmem:[#allocation8 + $0x1b8] sm:$0xff] }
0x113e   :  { %v1676_v38 = vmul.f32 0.5, %v1657_v35  ;;  %v1646_v39 = vmul.f32 %v3359_v34, %v3376_v36  ;;  %v2555_v35 = vpack.c.bf16 %v1783_v29, %v1782_v27  ;;  %v1793_v7 = vld [vmem:[#allocation8 + $0x178] sm:$0xff]  ;;  %v2001_v30 = vld [vmem:[#allocation10 + $0x30] sm:$0xff] }
0x113f   :  { %v1677_v41 = vmul.f32 0.5, %v1663_v37  ;;  %v1647_v42 = vmul.f32 %v3359_v34, %v3378_v48  ;;  %v1708_v37 = vrot.slane %v3387_v59, %v3365_v49  ;;  %v2002_v23 = vld [vmem:[#allocation10 + $0x38] sm:$0xff]  ;;  %v2005_v29 = vld [vmem:[#allocation10 + $0x50] sm:$0xff] }
0x1140   :  { %v1680_v43 = vadd.f32 1e-05, %v1676_v38  ;;  %v1650_v44 = vmul.f32 %v1646_v39, %v1646_v39  ;;  %v2557_v39 = vpack.c.bf16 %v1801_v32, %v1800_v31  ;;  %v2006_v31 = vld [vmem:[#allocation10 + $0x58] sm:$0xff] }
0x1141   :  { %v1681_v45 = vadd.f32 1e-05, %v1677_v41  ;;  %v1651_v47 = vmul.f32 %v1647_v42, %v1647_v42  ;;  %v1784_v41 = vld [vmem:[#allocation8 + $0x130] sm:$0xff]  ;;  %v1785_v42 = vld [vmem:[#allocation8 + $0x138] sm:$0xff]  ;;  %v2593_v32 = vpack.c.bf16 %v2006_v31, %v2005_v29 }
0x1142   :  { %2748 = vrsqrt.f32 %v1680_v43  ;;  %v1664_v50 = vrot.slane %v1650_v44, 4 }
0x1143   :  { %2750 = vrsqrt.f32 %v1681_v45  ;;  %v1670_v52 = vrot.slane %v1651_v47, 4  ;;  %v1802_v45 = vld [vmem:[#allocation8 + $0x1c0] sm:$0xff] }
0x1144   :  { %v1665_v53 = vadd.f32 %v1664_v50, %v1650_v44  ;;  %v1733_v44 = vrot.slane %v3392_v63, %v3365_v49  ;;  %v2559_v50 = vpack.c.bf16 %v1785_v42, %v1784_v41  ;;  %v2010_v41 = vld [vmem:[#allocation10 + $0x78] sm:$0xff] }
0x1145   :  { %v1671_v55 = vadd.f32 %v1670_v52, %v1651_v47  ;;  %v1803_v47 = vld [vmem:[#allocation8 + $0x1c8] sm:$0xff] }
0x1146   :  { %v1666_v57 = vrot.slane %v1665_v53, 2 }
0x1147   :  { %v1672_v58 = vrot.slane %v1671_v55, 2 }
0x1148   :  { %v1667_v40 = vadd.f32 %v1666_v57, %v1665_v53  ;;  %v2561_v53 = vpack.c.bf16 %v1803_v47, %v1802_v45  ;;  %v1787_v57 = vld [vmem:[#allocation8 + $0x148] sm:$0xff]  ;;  %v2163_v47 = vld [vmem:[%s3441_s10] ss:$0 sm:$0xff] }
0x1149   :  { %v1673_v60 = vadd.f32 %v1672_v58, %v1671_v55  ;;  %v1786_v55 = vld [vmem:[#allocation8 + $0x140] sm:$0xff] }
0x114a   :  { %v1668_v3 = vrot.slane %v1667_v40, 1 }
0x114b   :  { %v1674_v2 = vrot.slane %v1673_v60, 1 }
0x114c   :  { %v2749_v33 = vpop.eup %2748  ;;  %v1669_v56 = vadd.f32 %v1668_v3, %v1667_v40  ;;  %v1804_v40 = vld [vmem:[#allocation8 + $0x1d0] sm:$0xff]  ;;  %v1789_v3 = vld [vmem:[#allocation8 + $0x158] sm:$0xff] }
0x114d   :  { %v2751_v10 = vpop.eup %2750  ;;  %v1688_v11 = vmul.f32 %v2749_v33, %v1640_v4  ;;  %v1675_v13 = vadd.f32 %v1674_v2, %v1673_v60  ;;  %v1797_v4 = vld [vmem:[#allocation8 + $0x198] sm:$0xff]  ;;  %v2563_v2 = vpack.c.bf16 %v1787_v57, %v1786_v55  ;;  %v1788_v33 = vld [vmem:[#allocation8 + $0x150] sm:$0xff] }
0x114e   :  { %v1689_v15 = vmul.f32 %v2751_v10, %v3370_v8  ;;  %v1678_v12 = vmul.f32 0.5, %v1669_v56  ;;  %v2549_v8 = vpack.c.bf16 %v1797_v4, %v1796_v20  ;;  %v1805_v60 = vld [vmem:[#allocation8 + $0x1d8] sm:$0xff]  ;;  %v1807_v10 = vld [vmem:[#allocation8 + $0x1e8] sm:$0xff]  ;;  %v1995_v4 = vld [vmem:[#allocation10] sm:$0xff] }
0x114f   :  { %v1713_v54 = vmul.f32 %v1696_v1, %v1688_v11  ;;  %v1679_v17 = vmul.f32 0.5, %v1675_v13  ;;  %v2567_v11 = vpack.c.bf16 %v1789_v3, %v1788_v33  ;;  %v1809_v56 = vld [vmem:[#allocation8 + $0x1f8] sm:$0xff] }
0x1150   :  { %v1714_v18 = vmul.f32 %v1700_v6, %v1689_v15  ;;  %v1682_v24 = vadd.f32 1e-05, %v1678_v12  ;;  %v1806_v6 = vld [vmem:[#allocation8 + $0x1e0] sm:$0xff]  ;;  %v1996_v12 = vld [vmem:[#allocation10 + $0x8] sm:$0xff] }
0x1151   :  { %v1683_v62 = vadd.f32 1e-05, %v1679_v17  ;;  %v1738_v19 = vadd.f32 %v1721_v14, %v1713_v54  ;;  %v1704_v14 = vrot.slane %v3387_v59, %v3363_v46  ;;  %v2569_v15 = vpack.c.bf16 %v1807_v10, %v1806_v6  ;;  %v1791_v54 = vld [vmem:[#allocation8 + $0x168] sm:$0xff]  ;;  %v1808_v17 = vld [vmem:[#allocation8 + $0x1f0] sm:$0xff] }
0x1152   :  { %v1739_v9 = vadd.f32 %v1725_v16, %v1714_v18  ;;  %v1790_v16 = vld [vmem:[#allocation8 + $0x160] sm:$0xff] }
0x1153   :  { %2752 = vrsqrt.f32 %v1683_v62  ;;  %v1742_v61 = vmax.f32 %v1738_v19, 0.0  ;;  %v2571_v18 = vpack.c.bf16 %v1791_v54, %v1790_v16  ;;  %v2573_v19 = vpack.c.bf16 %v1809_v56, %v1808_v17 }
0x1154   :  { %v1743_v51 = vmax.f32 %v1739_v9, 0.0  ;;  %2754 = vrsqrt.f32 %v1682_v24  ;;  %v1729_v9 = vrot.slane %v3392_v63, %v3363_v46  ;;  %v1999_v46 = vld [vmem:[#allocation10 + $0x20] sm:$0xff]  ;;  %v2000_v63 = vld [vmem:[#allocation10 + $0x28] sm:$0xff]  ;;  %v2587_v24 = vpack.c.bf16 %v2002_v23, %v2001_v30 }
0x1155   :  { %v2584_v22 = vpack.c.bf16 %v2000_v63, %v1999_v46 }
0x1156   :  { %1881 = vmatprep.mubr.f32.mxu1 %v1743_v51  ;;  %v2578_v51 = vpack.c.bf16 %v1996_v12, %v1995_v4 }
0x1157   :  { %1882 = vmatmul.mubr.f32.vlgmr.msra.gmra.mrb[20].mxu1 %v1742_v61  ;;  %v1997_v61 = vld [vmem:[#allocation10 + $0x10] sm:$0xff] }
0x1158   :  { %2548 = vmatpush3.bf16.msra.mxu1 %v2547_v28  ;;  %v2893_v28 = vmov 0.0|0.0  }
0x1159   :  { %2550 = vmatprep.subr.bf16.mxu1 %v2549_v8  ;;  %v1998_v8 = vld [vmem:[#allocation10 + $0x18] sm:$0xff] }
0x115a   :  { %v2581_v21 = vpack.c.bf16 %v1998_v8, %v1997_v61 }
0x115c   :  { %2552 = vmatpush3.bf16.msra.mxu1 %v2551_v25  ;;  %v2003_v25 = vld [vmem:[#allocation10 + $0x40] sm:$0xff] }
0x115d   :  { %v2753_v38 = vpop.eup %2752  ;;  %2554 = vmatprep.subr.bf16.mxu1 %v2553_v26  ;;  %v2004_v26 = vld [vmem:[#allocation10 + $0x48] sm:$0xff] }
0x115e   :  { %v1691_v43 = vmul.f32 %v2753_v38, %v3378_v48  ;;  %v2565_v48 = vpack.c.bf16 %v1805_v60, %v1804_v40  ;;  %v2755_v49 = vpop.eup %2754  ;;  %v2590_v27 = vpack.c.bf16 %v2004_v26, %v2003_v25 }
0x115f   :  { %v1690_v13 = vmul.f32 %v2755_v49, %v3376_v36  ;;  %v2575_v36 = vpack.c.bf16 %v1793_v7, %v1792_v0 }
0x1160   :  { %2556 = vmatpush3.bf16.msra.mxu1 %v2555_v35  ;;  %v1716_v52 = vmul.f32 %v1708_v37, %v1691_v43  ;;  %v2007_v35 = vld [vmem:[#allocation10 + $0x60] sm:$0xff]  ;;  %v2008_v37 = vld [vmem:[#allocation10 + $0x68] sm:$0xff] }
0x1161   :  { %2558 = vmatprep.subr.bf16.mxu1 %v2557_v39  ;;  %v1715_v62 = vmul.f32 %v1704_v14, %v1690_v13  ;;  %v2596_v38 = vpack.c.bf16 %v2008_v37, %v2007_v35  ;;  %v2009_v39 = vld [vmem:[#allocation10 + $0x70] sm:$0xff] }
0x1162   :  { %v1741_v58 = vadd.f32 %v1733_v44, %v1716_v52  ;;  %v2599_v42 = vpack.c.bf16 %v2010_v41, %v2009_v39 }
0x1163   :  { %v1740_v59 = vadd.f32 %v1729_v9, %v1715_v62  ;;  %v2166_v9 = vld [vmem:[%s3445_s14] ss:$0 sm:$0xff] }
0x1164   :  { %2560 = vmatpush3.bf16.msra.mxu1 %v2559_v50  ;;  %v1745_v1 = vmax.f32 %v1741_v58, 0.0 }
0x1165   :  { %2562 = vmatprep.subr.bf16.mxu1 %v2561_v53  ;;  %v1744_v20 = vmax.f32 %v1740_v59, 0.0 }
0x1166   :  { %1951 = vmatprep.mubr.f32.mxu1 %v1745_v1 }
0x1168   :  { %2564 = vmatpush3.bf16.msra.mxu1 %v2563_v2 }
0x1169   :  { %2566 = vmatprep.subr.bf16.mxu1 %v2565_v48 }
0x116c   :  { %2568 = vmatpush3.bf16.msra.mxu1 %v2567_v11 }
0x116d   :  { %2570 = vmatprep.subr.bf16.mxu1 %v2569_v15 }
0x1170   :  { %2572 = vmatpush3.bf16.msra.mxu1 %v2571_v18  ;;  %v2164_v18 = vld [vmem:[%s3442_s11] ss:$0 sm:$0xff] }
0x1171   :  { %2574 = vmatprep.subr.bf16.mxu1 %v2573_v19 }
0x1174   :  { %2576 = vmatpush3.bf16.msra.mxu1 %v2575_v36 }
0x1175   :  { %2577 = vmatprep.subr.bf16.mxu1 %v2893_v28 }
0x1177   :  { %1952 = vmatmul.mubr.f32.vlgmr.msra.gmra.mrb[22].mxu1 %v1744_v20 }
0x1178   :  { %2579 = vmatpush3.bf16.msra.mxu1 %v2578_v51  ;;  %2286 = vmatprep.mubr.msk.f32.mxu1 %vm2894_vm3, %v2890_v5 }
0x1179   :  { %2580 = vmatprep.subr.bf16.mxu1 %v2893_v28 }
0x117c   :  { %2582 = vmatpush3.bf16.msra.mxu1 %v2581_v21 }
0x117d   :  { %2583 = vmatprep.subr.bf16.mxu1 %v2893_v28 }
0x1180   :  { %2585 = vmatpush3.bf16.msra.mxu1 %v2584_v22 }
0x1181   :  { %2586 = vmatprep.subr.bf16.mxu1 %v2893_v28 }
0x1184   :  { %2588 = vmatpush3.bf16.msra.mxu1 %v2587_v24 }
0x1185   :  { %2589 = vmatprep.subr.bf16.mxu1 %v2893_v28 }
0x1188   :  { %2591 = vmatpush3.bf16.msra.mxu1 %v2590_v27 }
0x1189   :  { %2592 = vmatprep.subr.bf16.mxu1 %v2893_v28 }
0x118c   :  { %2594 = vmatpush3.bf16.msra.mxu1 %v2593_v32 }
0x118d   :  { %2595 = vmatprep.subr.bf16.mxu1 %v2893_v28 }
0x1190   :  { %2597 = vmatpush3.bf16.msra.mxu1 %v2596_v38 }
0x1191   :  { %2598 = vmatprep.subr.bf16.mxu1 %v2893_v28 }
0x1194   :  { %2600 = vmatpush3.bf16.msra.mxu1 %v2599_v42 }
0x122a   :  { %v2199_v43 = vpop.f32.mrb[20].mxu1 }
0x122b   :  { %v2200_v44 = vpop.f32.mrb[21].mxu1 }
0x122c   :  { %v2201_v45 = vadd.f32 %v2200_v44, %v2199_v43 }
0x122e   :  { %v1884_v53 = vadd.f32 %v2201_v45, %v2163_v47 }
0x124a   :  { %v2234_v50 = vpop.f32.mrb[22].mxu1 }
0x124b   :  { %v2235_v52 = vpop.f32.mrb[23].mxu1 }
0x124c   :  { %v2236_v55 = vadd.f32 %v2235_v52, %v2234_v50 }
0x124e   :  { %v1954_v57 = vadd.f32 %v2236_v55, %v1884_v53 }
0x1250   :  { %v1959_v58 = vmul.f32 %v3359_v34, %v1954_v57 }
0x1252   :  { %v1960_v40 = vrot.slane %v1959_v58, 4 }
0x1254   :  { %v1961_v60 = vadd.f32 %v1960_v40, %v1959_v58 }
0x1256   :  { %v1962_v1 = vrot.slane %v1961_v60, 2 }
0x1258   :  { %v1963_v2 = vadd.f32 %v1962_v1, %v1961_v60 }
0x125a   :  { %v1964_v5 = vrot.slane %v1963_v2, 1 }
0x125c   :  { %v1965_v48 = vadd.f32 %v1964_v5, %v1963_v2 }
0x125e   :  { %v1966_v33 = vmul.f32 0.5, %v1965_v48 }
0x1260   :  { %v1967_v3 = vsub.f32 %v1954_v57, %v1966_v33 }
0x1262   :  { %v1968_v49 = vmul.f32 %v3359_v34, %v1967_v3  ;;  %v2165_v34 = vld [vmem:[%s3443_s12] ss:$0 sm:$0xff] }
0x1264   :  { %v1969_v6 = vmul.f32 %v1968_v49, %v1968_v49 }
0x1266   :  { %v1970_v10 = vrot.slane %v1969_v6, 4 }
0x1268   :  { %v1971_v11 = vadd.f32 %v1970_v10, %v1969_v6 }
0x126a   :  { %v1972_v13 = vrot.slane %v1971_v11, 2 }
0x126c   :  { %v1973_v14 = vadd.f32 %v1972_v13, %v1971_v11 }
0x126e   :  { %v1974_v15 = vrot.slane %v1973_v14, 1 }
0x1270   :  { %v1975_v16 = vadd.f32 %v1974_v15, %v1973_v14 }
0x1272   :  { %v1976_v54 = vmul.f32 0.5, %v1975_v16 }
0x1274   :  { %v1977_v17 = vadd.f32 1e-05, %v1976_v54 }
0x1276   :  { %2756 = vrsqrt.f32 %v1977_v17 }
0x1280   :  { %v2757_v56 = vpop.eup %2756 }
0x1281   :  { %v1979_v62 = vmul.f32 %v2757_v56, %v1967_v3 }
0x1283   :  { %v1986_v19 = vmul.f32 %v2164_v18, %v1979_v62 }
0x1285   :  { %v1993_v0 = vadd.f32 %v2165_v34, %v1986_v19 }
0x1287   :  { %v1994_v7 = vmax.f32 %v1993_v0, 0.0 }
0x1289   :  { %2287 = vmatmul.mubr.f32.vlgmr.msra.gmra.mrb[24].mxu1 %v1994_v7 }
0x135c   :  { %v2084_v36 = vpop.f32.mrb[24].mxu1 }
0x135d   :  { %v2085_v59 = vadd.f32 %v2166_v9, %v2084_v36  ;;  %v2288_v20 = vpop.f32.mrb[25].mxu1 }
0x135f   :  { %2088 = vmax.xlane.f32.xlu0 %v2085_v59 }
0x13ec   :  { %v2089_v4 = vpop.xlane.xlu0 %2088 }
0x13ed   :  { %v2090_v12 = vsub.f32 %v2085_v59, %v2089_v4 }
0x13ef   :  { %v2091_v51 = vmul.f32 1.442695, %v2090_v12 }
0x13f1   :  { %2758 = vpow2.f32 %v2091_v51 }
0x13fb   :  { %v2759_v28 = vpop.eup %2758 }
0x13fc   :  { %2093 = vadd.xlane.f32.xlu1 %v2759_v28 }
0x1489   :  { %v2094_v61 = vpop.xlane.xlu1 %2093 }
0x148a   :  { %2760 = vrcp.f32 %v2094_v61 }
0x1494   :  { %v2761_v8 = vpop.eup %2760 }
0x1495   :  { %v2096_v21 = vmul.f32 %v2761_v8, %v2759_v28 }
0x1497   :  { %2097 = vst [vmem:[%s3446_s15] sm:$0xff] %v2096_v21 }
0x1498   :  { %2102 = vsyncpa [#allocation4], 1 }
0x1499   :  { %2103 = vsyncpa [#allocation6], 1 }
0x149a   :  { %2104 = vsyncpa [#allocation9], 1 }

</bundles_post_ra>
